<compile_context>
chip_gen: v7x
topology: tpu7x:2x2x1
jax: 0.10.0
libtpu: 0.0.40
codegen_flags: <defaults>
</compile_context>

<pallas_src>
import functools

import numpy as np

import jax
import jax.numpy as jnp
from jax import lax
from jax.experimental import pallas as pl
from jax.experimental.pallas import tpu as pltpu

EPS = 1e-5
C1 = 16   # conv1 output channels
C2 = 32   # conv2 output channels
K2 = 5    # conv2 kernel size


# ------------------------------ Pallas kernel -------------------------------

def _convnet_kernel(p1_ref, w1_ref, sel_ref, w2_ref, slab_ref, o_ref):
    n, out_ch = o_ref.shape
    hw1 = sel_ref.shape[1]               # H1*W1 per image (layer-1 spatial positions)
    taps = w2_ref.shape[0] // C1         # 25
    hw2 = sel_ref.shape[0] // taps       # H2*W2 per image (layer-2 spatial positions)

    # ---- packed parameter slab (one DMA), static sub-tile slices -----------
    b1 = slab_ref[0:1, 0:C1]
    g1 = slab_ref[0:1, C1:2 * C1]
    be1 = slab_ref[0:1, 2 * C1:3 * C1]
    b2 = slab_ref[1:2, 0:C2]
    g2 = slab_ref[1:2, C2:2 * C2]
    be2 = slab_ref[1:2, 2 * C2:3 * C2]
    mapw = slab_ref[2:2 + out_ch, 0:C2]                  # (out_ch, 32) = map.weight

    # ---- layer 1: conv1-as-matmul + bias + ReLU + BN1 (train-mode stats) ---
    # p1 rows are (b, oh, ow); columns are the 16 output channels, so per-column
    # stats over axis 0 are exactly PyTorch's per-channel (N,H,W) batch stats.
    y1 = jnp.dot(p1_ref[...], w1_ref[...], preferred_element_type=jnp.float32)
    y1 = jnp.maximum(y1 + b1, 0.0)
    m1 = jnp.mean(y1, axis=0, keepdims=True)
    v1 = jnp.maximum(jnp.mean(y1 * y1, axis=0, keepdims=True) - m1 * m1, 0.0)
    s1 = g1 * lax.rsqrt(v1 + EPS)
    y1 = y1 * s1 + (be1 - m1 * s1)                       # (n*hw1, 16)

    # ---- layer 2: batch-shared gather + 25-tap conv + bias + ReLU + BN2 ----
    sel = sel_ref[...].astype(jnp.float32)               # (taps*hw2, hw1), exact 0/1
    # One gather matmul per image (static unroll over n); rows ordered (tap, oh, ow).
    patches = [jnp.dot(sel, y1[b * hw1:(b + 1) * hw1, :],
                       preferred_element_type=jnp.float32)          # (taps*hw2, 16)
               for b in range(n)]
    w2 = w2_ref[...]                                     # (taps*16, 32), rows (kh,kw,ci)
    y2 = jnp.zeros((n * hw2, C2), jnp.float32)
    for t in range(taps):                                # static unroll: 25 MXU matmuls
        lhs = jnp.concatenate(
            [p[t * hw2:(t + 1) * hw2, :] for p in patches], axis=0)  # (n*hw2, 16)
        y2 = y2 + jnp.dot(lhs, w2[t * C1:(t + 1) * C1, :],
                          preferred_element_type=jnp.float32)
    y2 = jnp.maximum(y2 + b2, 0.0)
    m2 = jnp.mean(y2, axis=0, keepdims=True)
    v2 = jnp.maximum(jnp.mean(y2 * y2, axis=0, keepdims=True) - m2 * m2, 0.0)
    s2 = g2 * lax.rsqrt(v2 + EPS)
    y2 = y2 * s2 + (be2 - m2 * s2)                       # (n*hw2, 32)

    # ---- AdaptiveAvgPool2d(1) + Linear(32 -> out, bias=False) --------------
    pooled = jnp.concatenate(
        [jnp.sum(y2[b * hw2:(b + 1) * hw2, :], axis=0, keepdims=True)
         for b in range(n)], axis=0) * (1.0 / hw2)       # (n, 32)
    o_ref[...] = lax.dot_general(pooled, mapw, (((1,), (1,)), ((), ())),
                                 preferred_element_type=jnp.float32)


# ------------------------------- host glue ----------------------------------

def _im2col(x, k, stride, pad):
    # (N, C, H, W) -> (N*Ho*Wo, C*k*k); columns ordered (c, kh, kw) to match PyTorch's
    # OIHW conv-weight flattening. One-time XLA prep for layer 1 only (tiny input).
    N, C, H, W = x.shape
    Ho = (H + 2 * pad - k) // stride + 1
    Wo = (W + 2 * pad - k) // stride + 1
    xp = jnp.pad(x, ((0, 0), (0, 0), (pad, pad), (pad, pad)))
    cols = []
    for kh in range(k):
        for kw in range(k):
            cols.append(xp[:, :, kh:kh + stride * Ho:stride, kw:kw + stride * Wo:stride])
    cols = jnp.stack(cols, axis=0).reshape(k, k, N, C, Ho, Wo)
    cols = cols.transpose(2, 4, 5, 3, 0, 1)              # (N, Ho, Wo, C, kh, kw)
    return cols.reshape(N * Ho * Wo, C * k * k), Ho, Wo


@functools.lru_cache(maxsize=None)
def _conv2_selection(h1, w1, k, stride, pad):
    # BATCH-SHARED 0/1 gather for the in-kernel layer-2 im2col, shape
    # (k*k*h2*w2, h1*w1).  Row (t, oh, ow) selects layer-1 position
    # (ih, iw) = (oh*stride + kh - pad, ow*stride + kw - pad); out-of-range rows stay
    # all-zero (== zero padding).  O(1) in batch size.
    h2 = (h1 + 2 * pad - k) // stride + 1
    w2 = (w1 + 2 * pad - k) // stride + 1
    sel = np.zeros((k * k * h2 * w2, h1 * w1), np.float32)
    for kh in range(k):
        for kw in range(k):
            t = kh * k + kw
            for oh in range(h2):
                ih = oh * stride + kh - pad
                if not (0 <= ih < h1):
                    continue
                for ow in range(w2):
                    iw = ow * stride + kw - pad
                    if 0 <= iw < w1:
                        sel[(t * h2 + oh) * w2 + ow, ih * w1 + iw] = 1.0
    return sel, h2, w2


def _pack_param_slab(params, out_channel):
    # One (>=8, 128) f32 slab holding all tiny parameters -> a single DMA.
    rows = max(8, ((2 + out_channel + 7) // 8) * 8)
    row0 = jnp.concatenate([params["conv1_b"], params["bn1_g"], params["bn1_b"],
                            jnp.zeros((128 - 3 * C1,), jnp.float32)])[None, :]
    row1 = jnp.concatenate([params["conv2_b"], params["bn2_g"], params["bn2_b"],
                            jnp.zeros((128 - 3 * C2,), jnp.float32)])[None, :]
    mapw = jnp.pad(params["map_w"], ((0, 0), (0, 128 - C2)))        # (out, 128)
    pad_rows = rows - 2 - out_channel
    return jnp.concatenate(
        [row0, row1, mapw, jnp.zeros((pad_rows, 128), jnp.float32)], axis=0)


@jax.jit
def convnet_forward(x, params):
    n = x.shape[0]
    out_channel = params["map_w"].shape[0]

    # Layer-1 im2col (tiny XLA prep); contraction dim padded 49 -> 56 (sublane aligned).
    p1, h1, w1 = _im2col(x, k=7, stride=2, pad=3)        # (n*h1*w1, cin*49)
    k1 = p1.shape[1]
    k1p = ((k1 + 7) // 8) * 8
    p1 = jnp.pad(p1, ((0, 0), (0, k1p - k1)))
    w1m = jnp.pad(params["conv1_w"].reshape(C1, -1).T, ((0, k1p - k1), (0, 0)))

    # Batch-shared conv2 gather; bf16 is lossless for 0/1 and halves its DMA bytes.
    sel_np, _, _ = _conv2_selection(h1, w1, K2, 2, 2)
    sel = jnp.asarray(sel_np, dtype=jnp.bfloat16)        # (25*h2*w2, h1*w1)

    # conv2 weights laid out (kh, kw, ci) x co so tap t is rows [t*16, (t+1)*16).
    w2m = params["conv2_w"].transpose(2, 3, 1, 0).reshape(K2 * K2 * C1, C2)

    slab = _pack_param_slab(params, out_channel)

    vmem = pl.BlockSpec(memory_space=pltpu.MemorySpace.VMEM)
    return pl.pallas_call(
        _convnet_kernel,
        out_shape=jax.ShapeDtypeStruct((n, out_channel), jnp.float32),
        in_specs=[vmem] * 5,
        out_specs=vmem,
        compiler_params=pltpu.CompilerParams(vmem_limit_bytes=32 * 1024 * 1024),
    )(p1, w1m, sel, w2m, slab)


# ------------------------------- reference ----------------------------------

def convnet_reference(x, params):
    # Pure-JAX reference of the exact PyTorch forward (train-mode BatchNorm).
    def conv(x, w, b, stride, pad):
        y = lax.conv_general_dilated(
            x, w, (stride, stride), [(pad, pad), (pad, pad)],
            dimension_numbers=("NCHW", "OIHW", "NCHW"))
        return y + b[None, :, None, None]

    def bn(x, g, b):
        mean = jnp.mean(x, axis=(0, 2, 3), keepdims=True)
        var = jnp.mean((x - mean) ** 2, axis=(0, 2, 3), keepdims=True)
        return (x - mean) * lax.rsqrt(var + EPS) * g[None, :, None, None] + b[None, :, None, None]

    y = bn(jnp.maximum(conv(x, params["conv1_w"], params["conv1_b"], 2, 3), 0.0),
           params["bn1_g"], params["bn1_b"])
    y = bn(jnp.maximum(conv(y, params["conv2_w"], params["conv2_b"], 2, 2), 0.0),
           params["bn2_g"], params["bn2_b"])
    pooled = jnp.mean(y, axis=(2, 3))
    return pooled @ params["map_w"].T


def init_params(key, in_channel=1, out_channel=2):
    k1, k2, k3 = jax.random.split(key, 3)
    return {
        "conv1_w": 0.1 * jax.random.normal(k1, (C1, in_channel, 7, 7), jnp.float32),
        "conv1_b": jnp.zeros((C1,), jnp.float32),
        "conv2_w": 0.1 * jax.random.normal(k2, (C2, C1, K2, K2), jnp.float32),
        "conv2_b": jnp.zeros((C2,), jnp.float32),
        "bn1_g": jnp.ones((C1,), jnp.float32),   # PyTorch default BN init (gamma=1, beta=0)
        "bn1_b": jnp.zeros((C1,), jnp.float32),
        "bn2_g": jnp.ones((C2,), jnp.float32),
        "bn2_b": jnp.zeros((C2,), jnp.float32),
        "map_w": 0.1 * jax.random.normal(k3, (out_channel, C2), jnp.float32),
    }


if __name__ == "__main__":
    key = jax.random.PRNGKey(0)
    kx, kp = jax.random.split(key)
    x = jax.random.normal(kx, (2, 1, 16, 16), jnp.float32)  # NCHW, like PyTorch
    params = init_params(kp, in_channel=1, out_channel=2)

    out = jax.block_until_ready(convnet_forward(x, params))
    ref = jax.block_until_ready(convnet_reference(x, params))

    assert out.shape == (2, 2), out.shape
    assert jnp.allclose(out, ref, atol=1e-3, rtol=1e-3), (out, ref)
    print("KERNEL_OK")
</pallas_src>

<mosaic_0001>
module attributes {stable_mosaic.version = 11 : i64} {
  func.func @_convnet_kernel(%arg0: memref<128x56xf32, #tpu.memory_space<vmem>>, %arg1: memref<56x16xf32, #tpu.memory_space<vmem>>, %arg2: memref<400x64xbf16, #tpu.memory_space<vmem>>, %arg3: memref<400x32xf32, #tpu.memory_space<vmem>>, %arg4: memref<8x128xf32, #tpu.memory_space<vmem>>, %arg5: memref<2x2xf32, #tpu.memory_space<vmem>>) attributes {dimension_semantics = [], scalar_prefetch = 0 : i64, scratch_operands = 0 : i64, tpu.core_type = #tpu.core_type<tc>} {
    %c0 = arith.constant 0 : index
    %c0_0 = arith.constant 0 : index
    %0 = vector.load %arg4[%c0, %c0_0] : memref<8x128xf32, #tpu.memory_space<vmem>>, vector<1x16xf32>
    %c0_1 = arith.constant 0 : index
    %c16 = arith.constant 16 : index
    %1 = vector.load %arg4[%c0_1, %c16] : memref<8x128xf32, #tpu.memory_space<vmem>>, vector<1x16xf32>
    %c0_2 = arith.constant 0 : index
    %c32 = arith.constant 32 : index
    %2 = vector.load %arg4[%c0_2, %c32] : memref<8x128xf32, #tpu.memory_space<vmem>>, vector<1x16xf32>
    %c1 = arith.constant 1 : index
    %c0_3 = arith.constant 0 : index
    %3 = vector.load %arg4[%c1, %c0_3] : memref<8x128xf32, #tpu.memory_space<vmem>>, vector<1x32xf32>
    %c1_4 = arith.constant 1 : index
    %c32_5 = arith.constant 32 : index
    %4 = vector.load %arg4[%c1_4, %c32_5] : memref<8x128xf32, #tpu.memory_space<vmem>>, vector<1x32xf32>
    %c1_6 = arith.constant 1 : index
    %c64 = arith.constant 64 : index
    %5 = vector.load %arg4[%c1_6, %c64] : memref<8x128xf32, #tpu.memory_space<vmem>>, vector<1x32xf32>
    %c2 = arith.constant 2 : index
    %c0_7 = arith.constant 0 : index
    %6 = vector.load %arg4[%c2, %c0_7] : memref<8x128xf32, #tpu.memory_space<vmem>>, vector<2x32xf32>
    %c0_8 = arith.constant 0 : index
    %c0_9 = arith.constant 0 : index
    %7 = vector.load %arg0[%c0_8, %c0_9] : memref<128x56xf32, #tpu.memory_space<vmem>>, vector<128x56xf32>
    %c0_10 = arith.constant 0 : index
    %c0_11 = arith.constant 0 : index
    %8 = vector.load %arg1[%c0_10, %c0_11] : memref<56x16xf32, #tpu.memory_space<vmem>>, vector<56x16xf32>
    %cst = arith.constant dense<0.000000e+00> : vector<128x16xf32>
    %9 = tpu.matmul %7, %8, %cst {dimension_numbers = #tpu.dot_dimension_numbers<[1], [0], [0], [1], [0, 0, 1, 1], [], []>} : vector<128x56xf32>, vector<56x16xf32>, vector<128x16xf32> -> vector<128x16xf32>
    %10 = vector.broadcast %0 : vector<1x16xf32> to vector<128x16xf32>
    %11 = arith.addf %9, %10 : vector<128x16xf32>
    %cst_12 = arith.constant 0.000000e+00 : f32
    %12 = vector.broadcast %cst_12 : f32 to vector<128x16xf32>
    %13 = arith.maximumf %11, %12 : vector<128x16xf32>
    %cst_13 = arith.constant dense<0.000000e+00> : vector<16xf32>
    %14 = vector.multi_reduction <add>, %13, %cst_13 [0] : vector<128x16xf32> to vector<16xf32>
    %15 = vector.shape_cast %14 : vector<16xf32> to vector<1x16xf32>
    %cst_14 = arith.constant 1.280000e+02 : f32
    %16 = vector.broadcast %cst_14 : f32 to vector<1x16xf32>
    %17 = arith.divf %15, %16 : vector<1x16xf32>
    %18 = arith.mulf %13, %13 : vector<128x16xf32>
    %cst_15 = arith.constant dense<0.000000e+00> : vector<16xf32>
    %19 = vector.multi_reduction <add>, %18, %cst_15 [0] : vector<128x16xf32> to vector<16xf32>
    %20 = vector.shape_cast %19 : vector<16xf32> to vector<1x16xf32>
    %cst_16 = arith.constant 1.280000e+02 : f32
    %21 = vector.broadcast %cst_16 : f32 to vector<1x16xf32>
    %22 = arith.divf %20, %21 : vector<1x16xf32>
    %23 = arith.mulf %17, %17 : vector<1x16xf32>
    %24 = arith.subf %22, %23 : vector<1x16xf32>
    %cst_17 = arith.constant 0.000000e+00 : f32
    %25 = vector.broadcast %cst_17 : f32 to vector<1x16xf32>
    %26 = arith.maximumf %24, %25 : vector<1x16xf32>
    %cst_18 = arith.constant 9.99999974E-6 : f32
    %27 = vector.broadcast %cst_18 : f32 to vector<1x16xf32>
    %28 = arith.addf %26, %27 : vector<1x16xf32>
    %29 = math.rsqrt %28 : vector<1x16xf32>
    %30 = arith.mulf %1, %29 : vector<1x16xf32>
    %31 = vector.broadcast %30 : vector<1x16xf32> to vector<128x16xf32>
    %32 = arith.mulf %13, %31 : vector<128x16xf32>
    %33 = arith.mulf %17, %30 : vector<1x16xf32>
    %34 = arith.subf %2, %33 : vector<1x16xf32>
    %35 = vector.broadcast %34 : vector<1x16xf32> to vector<128x16xf32>
    %36 = arith.addf %32, %35 : vector<128x16xf32>
    %c0_19 = arith.constant 0 : index
    %c0_20 = arith.constant 0 : index
    %37 = vector.load %arg2[%c0_19, %c0_20] : memref<400x64xbf16, #tpu.memory_space<vmem>>, vector<400x64xbf16>
    %38 = arith.extf %37 : vector<400x64xbf16> to vector<400x64xf32>
    %39 = vector.extract_strided_slice %36 {offsets = [0, 0], sizes = [64, 16], strides = [1, 1]} : vector<128x16xf32> to vector<64x16xf32>
    %cst_21 = arith.constant dense<0.000000e+00> : vector<400x16xf32>
    %40 = tpu.matmul %38, %39, %cst_21 {dimension_numbers = #tpu.dot_dimension_numbers<[1], [0], [0], [1], [0, 0, 1, 1], [], []>} : vector<400x64xf32>, vector<64x16xf32>, vector<400x16xf32> -> vector<400x16xf32>
    %41 = vector.extract_strided_slice %36 {offsets = [64, 0], sizes = [64, 16], strides = [1, 1]} : vector<128x16xf32> to vector<64x16xf32>
    %cst_22 = arith.constant dense<0.000000e+00> : vector<400x16xf32>
    %42 = tpu.matmul %38, %41, %cst_22 {dimension_numbers = #tpu.dot_dimension_numbers<[1], [0], [0], [1], [0, 0, 1, 1], [], []>} : vector<400x64xf32>, vector<64x16xf32>, vector<400x16xf32> -> vector<400x16xf32>
    %c0_23 = arith.constant 0 : index
    %c0_24 = arith.constant 0 : index
    %43 = vector.load %arg3[%c0_23, %c0_24] : memref<400x32xf32, #tpu.memory_space<vmem>>, vector<400x32xf32>
    %cst_25 = arith.constant 0.000000e+00 : f32
    %44 = vector.broadcast %cst_25 : f32 to vector<32x32xf32>
    %45 = vector.extract_strided_slice %40 {offsets = [0, 0], sizes = [16, 16], strides = [1, 1]} : vector<400x16xf32> to vector<16x16xf32>
    %46 = vector.extract_strided_slice %42 {offsets = [0, 0], sizes = [16, 16], strides = [1, 1]} : vector<400x16xf32> to vector<16x16xf32>
    %47 = tpu.concatenate %45, %46 in 0 : vector<16x16xf32>, vector<16x16xf32> -> vector<32x16xf32>
    %48 = vector.extract_strided_slice %43 {offsets = [0, 0], sizes = [16, 32], strides = [1, 1]} : vector<400x32xf32> to vector<16x32xf32>
    %cst_26 = arith.constant dense<0.000000e+00> : vector<32x32xf32>
    %49 = tpu.matmul %47, %48, %cst_26 {dimension_numbers = #tpu.dot_dimension_numbers<[1], [0], [0], [1], [0, 0, 1, 1], [], []>} : vector<32x16xf32>, vector<16x32xf32>, vector<32x32xf32> -> vector<32x32xf32>
    %50 = arith.addf %44, %49 : vector<32x32xf32>
    %51 = vector.extract_strided_slice %40 {offsets = [16, 0], sizes = [16, 16], strides = [1, 1]} : vector<400x16xf32> to vector<16x16xf32>
    %52 = vector.extract_strided_slice %42 {offsets = [16, 0], sizes = [16, 16], strides = [1, 1]} : vector<400x16xf32> to vector<16x16xf32>
    %53 = tpu.concatenate %51, %52 in 0 : vector<16x16xf32>, vector<16x16xf32> -> vector<32x16xf32>
    %54 = vector.extract_strided_slice %43 {offsets = [16, 0], sizes = [16, 32], strides = [1, 1]} : vector<400x32xf32> to vector<16x32xf32>
    %cst_27 = arith.constant dense<0.000000e+00> : vector<32x32xf32>
    %55 = tpu.matmul %53, %54, %cst_27 {dimension_numbers = #tpu.dot_dimension_numbers<[1], [0], [0], [1], [0, 0, 1, 1], [], []>} : vector<32x16xf32>, vector<16x32xf32>, vector<32x32xf32> -> vector<32x32xf32>
    %56 = arith.addf %50, %55 : vector<32x32xf32>
    %57 = vector.extract_strided_slice %40 {offsets = [32, 0], sizes = [16, 16], strides = [1, 1]} : vector<400x16xf32> to vector<16x16xf32>
    %58 = vector.extract_strided_slice %42 {offsets = [32, 0], sizes = [16, 16], strides = [1, 1]} : vector<400x16xf32> to vector<16x16xf32>
    %59 = tpu.concatenate %57, %58 in 0 : vector<16x16xf32>, vector<16x16xf32> -> vector<32x16xf32>
    %60 = vector.extract_strided_slice %43 {offsets = [32, 0], sizes = [16, 32], strides = [1, 1]} : vector<400x32xf32> to vector<16x32xf32>
    %cst_28 = arith.constant dense<0.000000e+00> : vector<32x32xf32>
    %61 = tpu.matmul %59, %60, %cst_28 {dimension_numbers = #tpu.dot_dimension_numbers<[1], [0], [0], [1], [0, 0, 1, 1], [], []>} : vector<32x16xf32>, vector<16x32xf32>, vector<32x32xf32> -> vector<32x32xf32>
    %62 = arith.addf %56, %61 : vector<32x32xf32>
    %63 = vector.extract_strided_slice %40 {offsets = [48, 0], sizes = [16, 16], strides = [1, 1]} : vector<400x16xf32> to vector<16x16xf32>
    %64 = vector.extract_strided_slice %42 {offsets = [48, 0], sizes = [16, 16], strides = [1, 1]} : vector<400x16xf32> to vector<16x16xf32>
    %65 = tpu.concatenate %63, %64 in 0 : vector<16x16xf32>, vector<16x16xf32> -> vector<32x16xf32>
    %66 = vector.extract_strided_slice %43 {offsets = [48, 0], sizes = [16, 32], strides = [1, 1]} : vector<400x32xf32> to vector<16x32xf32>
    %cst_29 = arith.constant dense<0.000000e+00> : vector<32x32xf32>
    %67 = tpu.matmul %65, %66, %cst_29 {dimension_numbers = #tpu.dot_dimension_numbers<[1], [0], [0], [1], [0, 0, 1, 1], [], []>} : vector<32x16xf32>, vector<16x32xf32>, vector<32x32xf32> -> vector<32x32xf32>
    %68 = arith.addf %62, %67 : vector<32x32xf32>
    %69 = vector.extract_strided_slice %40 {offsets = [64, 0], sizes = [16, 16], strides = [1, 1]} : vector<400x16xf32> to vector<16x16xf32>
    %70 = vector.extract_strided_slice %42 {offsets = [64, 0], sizes = [16, 16], strides = [1, 1]} : vector<400x16xf32> to vector<16x16xf32>
    %71 = tpu.concatenate %69, %70 in 0 : vector<16x16xf32>, vector<16x16xf32> -> vector<32x16xf32>
    %72 = vector.extract_strided_slice %43 {offsets = [64, 0], sizes = [16, 32], strides = [1, 1]} : vector<400x32xf32> to vector<16x32xf32>
    %cst_30 = arith.constant dense<0.000000e+00> : vector<32x32xf32>
    %73 = tpu.matmul %71, %72, %cst_30 {dimension_numbers = #tpu.dot_dimension_numbers<[1], [0], [0], [1], [0, 0, 1, 1], [], []>} : vector<32x16xf32>, vector<16x32xf32>, vector<32x32xf32> -> vector<32x32xf32>
    %74 = arith.addf %68, %73 : vector<32x32xf32>
    %75 = vector.extract_strided_slice %40 {offsets = [80, 0], sizes = [16, 16], strides = [1, 1]} : vector<400x16xf32> to vector<16x16xf32>
    %76 = vector.extract_strided_slice %42 {offsets = [80, 0], sizes = [16, 16], strides = [1, 1]} : vector<400x16xf32> to vector<16x16xf32>
    %77 = tpu.concatenate %75, %76 in 0 : vector<16x16xf32>, vector<16x16xf32> -> vector<32x16xf32>
    %78 = vector.extract_strided_slice %43 {offsets = [80, 0], sizes = [16, 32], strides = [1, 1]} : vector<400x32xf32> to vector<16x32xf32>
    %cst_31 = arith.constant dense<0.000000e+00> : vector<32x32xf32>
    %79 = tpu.matmul %77, %78, %cst_31 {dimension_numbers = #tpu.dot_dimension_numbers<[1], [0], [0], [1], [0, 0, 1, 1], [], []>} : vector<32x16xf32>, vector<16x32xf32>, vector<32x32xf32> -> vector<32x32xf32>
    %80 = arith.addf %74, %79 : vector<32x32xf32>
    %81 = vector.extract_strided_slice %40 {offsets = [96, 0], sizes = [16, 16], strides = [1, 1]} : vector<400x16xf32> to vector<16x16xf32>
    %82 = vector.extract_strided_slice %42 {offsets = [96, 0], sizes = [16, 16], strides = [1, 1]} : vector<400x16xf32> to vector<16x16xf32>
    %83 = tpu.concatenate %81, %82 in 0 : vector<16x16xf32>, vector<16x16xf32> -> vector<32x16xf32>
    %84 = vector.extract_strided_slice %43 {offsets = [96, 0], sizes = [16, 32], strides = [1, 1]} : vector<400x32xf32> to vector<16x32xf32>
    %cst_32 = arith.constant dense<0.000000e+00> : vector<32x32xf32>
    %85 = tpu.matmul %83, %84, %cst_32 {dimension_numbers = #tpu.dot_dimension_numbers<[1], [0], [0], [1], [0, 0, 1, 1], [], []>} : vector<32x16xf32>, vector<16x32xf32>, vector<32x32xf32> -> vector<32x32xf32>
    %86 = arith.addf %80, %85 : vector<32x32xf32>
    %87 = vector.extract_strided_slice %40 {offsets = [112, 0], sizes = [16, 16], strides = [1, 1]} : vector<400x16xf32> to vector<16x16xf32>
    %88 = vector.extract_strided_slice %42 {offsets = [112, 0], sizes = [16, 16], strides = [1, 1]} : vector<400x16xf32> to vector<16x16xf32>
    %89 = tpu.concatenate %87, %88 in 0 : vector<16x16xf32>, vector<16x16xf32> -> vector<32x16xf32>
    %90 = vector.extract_strided_slice %43 {offsets = [112, 0], sizes = [16, 32], strides = [1, 1]} : vector<400x32xf32> to vector<16x32xf32>
    %cst_33 = arith.constant dense<0.000000e+00> : vector<32x32xf32>
    %91 = tpu.matmul %89, %90, %cst_33 {dimension_numbers = #tpu.dot_dimension_numbers<[1], [0], [0], [1], [0, 0, 1, 1], [], []>} : vector<32x16xf32>, vector<16x32xf32>, vector<32x32xf32> -> vector<32x32xf32>
    %92 = arith.addf %86, %91 : vector<32x32xf32>
    %93 = vector.extract_strided_slice %40 {offsets = [128, 0], sizes = [16, 16], strides = [1, 1]} : vector<400x16xf32> to vector<16x16xf32>
    %94 = vector.extract_strided_slice %42 {offsets = [128, 0], sizes = [16, 16], strides = [1, 1]} : vector<400x16xf32> to vector<16x16xf32>
    %95 = tpu.concatenate %93, %94 in 0 : vector<16x16xf32>, vector<16x16xf32> -> vector<32x16xf32>
    %96 = vector.extract_strided_slice %43 {offsets = [128, 0], sizes = [16, 32], strides = [1, 1]} : vector<400x32xf32> to vector<16x32xf32>
    %cst_34 = arith.constant dense<0.000000e+00> : vector<32x32xf32>
    %97 = tpu.matmul %95, %96, %cst_34 {dimension_numbers = #tpu.dot_dimension_numbers<[1], [0], [0], [1], [0, 0, 1, 1], [], []>} : vector<32x16xf32>, vector<16x32xf32>, vector<32x32xf32> -> vector<32x32xf32>
    %98 = arith.addf %92, %97 : vector<32x32xf32>
    %99 = vector.extract_strided_slice %40 {offsets = [144, 0], sizes = [16, 16], strides = [1, 1]} : vector<400x16xf32> to vector<16x16xf32>
    %100 = vector.extract_strided_slice %42 {offsets = [144, 0], sizes = [16, 16], strides = [1, 1]} : vector<400x16xf32> to vector<16x16xf32>
    %101 = tpu.concatenate %99, %100 in 0 : vector<16x16xf32>, vector<16x16xf32> -> vector<32x16xf32>
    %102 = vector.extract_strided_slice %43 {offsets = [144, 0], sizes = [16, 32], strides = [1, 1]} : vector<400x32xf32> to vector<16x32xf32>
    %cst_35 = arith.constant dense<0.000000e+00> : vector<32x32xf32>
    %103 = tpu.matmul %101, %102, %cst_35 {dimension_numbers = #tpu.dot_dimension_numbers<[1], [0], [0], [1], [0, 0, 1, 1], [], []>} : vector<32x16xf32>, vector<16x32xf32>, vector<32x32xf32> -> vector<32x32xf32>
    %104 = arith.addf %98, %103 : vector<32x32xf32>
    %105 = vector.extract_strided_slice %40 {offsets = [160, 0], sizes = [16, 16], strides = [1, 1]} : vector<400x16xf32> to vector<16x16xf32>
    %106 = vector.extract_strided_slice %42 {offsets = [160, 0], sizes = [16, 16], strides = [1, 1]} : vector<400x16xf32> to vector<16x16xf32>
    %107 = tpu.concatenate %105, %106 in 0 : vector<16x16xf32>, vector<16x16xf32> -> vector<32x16xf32>
    %108 = vector.extract_strided_slice %43 {offsets = [160, 0], sizes = [16, 32], strides = [1, 1]} : vector<400x32xf32> to vector<16x32xf32>
    %cst_36 = arith.constant dense<0.000000e+00> : vector<32x32xf32>
    %109 = tpu.matmul %107, %108, %cst_36 {dimension_numbers = #tpu.dot_dimension_numbers<[1], [0], [0], [1], [0, 0, 1, 1], [], []>} : vector<32x16xf32>, vector<16x32xf32>, vector<32x32xf32> -> vector<32x32xf32>
    %110 = arith.addf %104, %109 : vector<32x32xf32>
    %111 = vector.extract_strided_slice %40 {offsets = [176, 0], sizes = [16, 16], strides = [1, 1]} : vector<400x16xf32> to vector<16x16xf32>
    %112 = vector.extract_strided_slice %42 {offsets = [176, 0], sizes = [16, 16], strides = [1, 1]} : vector<400x16xf32> to vector<16x16xf32>
    %113 = tpu.concatenate %111, %112 in 0 : vector<16x16xf32>, vector<16x16xf32> -> vector<32x16xf32>
    %114 = vector.extract_strided_slice %43 {offsets = [176, 0], sizes = [16, 32], strides = [1, 1]} : vector<400x32xf32> to vector<16x32xf32>
    %cst_37 = arith.constant dense<0.000000e+00> : vector<32x32xf32>
    %115 = tpu.matmul %113, %114, %cst_37 {dimension_numbers = #tpu.dot_dimension_numbers<[1], [0], [0], [1], [0, 0, 1, 1], [], []>} : vector<32x16xf32>, vector<16x32xf32>, vector<32x32xf32> -> vector<32x32xf32>
    %116 = arith.addf %110, %115 : vector<32x32xf32>
    %117 = vector.extract_strided_slice %40 {offsets = [192, 0], sizes = [16, 16], strides = [1, 1]} : vector<400x16xf32> to vector<16x16xf32>
    %118 = vector.extract_strided_slice %42 {offsets = [192, 0], sizes = [16, 16], strides = [1, 1]} : vector<400x16xf32> to vector<16x16xf32>
    %119 = tpu.concatenate %117, %118 in 0 : vector<16x16xf32>, vector<16x16xf32> -> vector<32x16xf32>
    %120 = vector.extract_strided_slice %43 {offsets = [192, 0], sizes = [16, 32], strides = [1, 1]} : vector<400x32xf32> to vector<16x32xf32>
    %cst_38 = arith.constant dense<0.000000e+00> : vector<32x32xf32>
    %121 = tpu.matmul %119, %120, %cst_38 {dimension_numbers = #tpu.dot_dimension_numbers<[1], [0], [0], [1], [0, 0, 1, 1], [], []>} : vector<32x16xf32>, vector<16x32xf32>, vector<32x32xf32> -> vector<32x32xf32>
    %122 = arith.addf %116, %121 : vector<32x32xf32>
    %123 = vector.extract_strided_slice %40 {offsets = [208, 0], sizes = [16, 16], strides = [1, 1]} : vector<400x16xf32> to vector<16x16xf32>
    %124 = vector.extract_strided_slice %42 {offsets = [208, 0], sizes = [16, 16], strides = [1, 1]} : vector<400x16xf32> to vector<16x16xf32>
    %125 = tpu.concatenate %123, %124 in 0 : vector<16x16xf32>, vector<16x16xf32> -> vector<32x16xf32>
    %126 = vector.extract_strided_slice %43 {offsets = [208, 0], sizes = [16, 32], strides = [1, 1]} : vector<400x32xf32> to vector<16x32xf32>
    %cst_39 = arith.constant dense<0.000000e+00> : vector<32x32xf32>
    %127 = tpu.matmul %125, %126, %cst_39 {dimension_numbers = #tpu.dot_dimension_numbers<[1], [0], [0], [1], [0, 0, 1, 1], [], []>} : vector<32x16xf32>, vector<16x32xf32>, vector<32x32xf32> -> vector<32x32xf32>
    %128 = arith.addf %122, %127 : vector<32x32xf32>
    %129 = vector.extract_strided_slice %40 {offsets = [224, 0], sizes = [16, 16], strides = [1, 1]} : vector<400x16xf32> to vector<16x16xf32>
    %130 = vector.extract_strided_slice %42 {offsets = [224, 0], sizes = [16, 16], strides = [1, 1]} : vector<400x16xf32> to vector<16x16xf32>
    %131 = tpu.concatenate %129, %130 in 0 : vector<16x16xf32>, vector<16x16xf32> -> vector<32x16xf32>
    %132 = vector.extract_strided_slice %43 {offsets = [224, 0], sizes = [16, 32], strides = [1, 1]} : vector<400x32xf32> to vector<16x32xf32>
    %cst_40 = arith.constant dense<0.000000e+00> : vector<32x32xf32>
    %133 = tpu.matmul %131, %132, %cst_40 {dimension_numbers = #tpu.dot_dimension_numbers<[1], [0], [0], [1], [0, 0, 1, 1], [], []>} : vector<32x16xf32>, vector<16x32xf32>, vector<32x32xf32> -> vector<32x32xf32>
    %134 = arith.addf %128, %133 : vector<32x32xf32>
    %135 = vector.extract_strided_slice %40 {offsets = [240, 0], sizes = [16, 16], strides = [1, 1]} : vector<400x16xf32> to vector<16x16xf32>
    %136 = vector.extract_strided_slice %42 {offsets = [240, 0], sizes = [16, 16], strides = [1, 1]} : vector<400x16xf32> to vector<16x16xf32>
    %137 = tpu.concatenate %135, %136 in 0 : vector<16x16xf32>, vector<16x16xf32> -> vector<32x16xf32>
    %138 = vector.extract_strided_slice %43 {offsets = [240, 0], sizes = [16, 32], strides = [1, 1]} : vector<400x32xf32> to vector<16x32xf32>
    %cst_41 = arith.constant dense<0.000000e+00> : vector<32x32xf32>
    %139 = tpu.matmul %137, %138, %cst_41 {dimension_numbers = #tpu.dot_dimension_numbers<[1], [0], [0], [1], [0, 0, 1, 1], [], []>} : vector<32x16xf32>, vector<16x32xf32>, vector<32x32xf32> -> vector<32x32xf32>
    %140 = arith.addf %134, %139 : vector<32x32xf32>
    %141 = vector.extract_strided_slice %40 {offsets = [256, 0], sizes = [16, 16], strides = [1, 1]} : vector<400x16xf32> to vector<16x16xf32>
    %142 = vector.extract_strided_slice %42 {offsets = [256, 0], sizes = [16, 16], strides = [1, 1]} : vector<400x16xf32> to vector<16x16xf32>
    %143 = tpu.concatenate %141, %142 in 0 : vector<16x16xf32>, vector<16x16xf32> -> vector<32x16xf32>
    %144 = vector.extract_strided_slice %43 {offsets = [256, 0], sizes = [16, 32], strides = [1, 1]} : vector<400x32xf32> to vector<16x32xf32>
    %cst_42 = arith.constant dense<0.000000e+00> : vector<32x32xf32>
    %145 = tpu.matmul %143, %144, %cst_42 {dimension_numbers = #tpu.dot_dimension_numbers<[1], [0], [0], [1], [0, 0, 1, 1], [], []>} : vector<32x16xf32>, vector<16x32xf32>, vector<32x32xf32> -> vector<32x32xf32>
    %146 = arith.addf %140, %145 : vector<32x32xf32>
    %147 = vector.extract_strided_slice %40 {offsets = [272, 0], sizes = [16, 16], strides = [1, 1]} : vector<400x16xf32> to vector<16x16xf32>
    %148 = vector.extract_strided_slice %42 {offsets = [272, 0], sizes = [16, 16], strides = [1, 1]} : vector<400x16xf32> to vector<16x16xf32>
    %149 = tpu.concatenate %147, %148 in 0 : vector<16x16xf32>, vector<16x16xf32> -> vector<32x16xf32>
    %150 = vector.extract_strided_slice %43 {offsets = [272, 0], sizes = [16, 32], strides = [1, 1]} : vector<400x32xf32> to vector<16x32xf32>
    %cst_43 = arith.constant dense<0.000000e+00> : vector<32x32xf32>
    %151 = tpu.matmul %149, %150, %cst_43 {dimension_numbers = #tpu.dot_dimension_numbers<[1], [0], [0], [1], [0, 0, 1, 1], [], []>} : vector<32x16xf32>, vector<16x32xf32>, vector<32x32xf32> -> vector<32x32xf32>
    %152 = arith.addf %146, %151 : vector<32x32xf32>
    %153 = vector.extract_strided_slice %40 {offsets = [288, 0], sizes = [16, 16], strides = [1, 1]} : vector<400x16xf32> to vector<16x16xf32>
    %154 = vector.extract_strided_slice %42 {offsets = [288, 0], sizes = [16, 16], strides = [1, 1]} : vector<400x16xf32> to vector<16x16xf32>
    %155 = tpu.concatenate %153, %154 in 0 : vector<16x16xf32>, vector<16x16xf32> -> vector<32x16xf32>
    %156 = vector.extract_strided_slice %43 {offsets = [288, 0], sizes = [16, 32], strides = [1, 1]} : vector<400x32xf32> to vector<16x32xf32>
    %cst_44 = arith.constant dense<0.000000e+00> : vector<32x32xf32>
    %157 = tpu.matmul %155, %156, %cst_44 {dimension_numbers = #tpu.dot_dimension_numbers<[1], [0], [0], [1], [0, 0, 1, 1], [], []>} : vector<32x16xf32>, vector<16x32xf32>, vector<32x32xf32> -> vector<32x32xf32>
    %158 = arith.addf %152, %157 : vector<32x32xf32>
    %159 = vector.extract_strided_slice %40 {offsets = [304, 0], sizes = [16, 16], strides = [1, 1]} : vector<400x16xf32> to vector<16x16xf32>
    %160 = vector.extract_strided_slice %42 {offsets = [304, 0], sizes = [16, 16], strides = [1, 1]} : vector<400x16xf32> to vector<16x16xf32>
    %161 = tpu.concatenate %159, %160 in 0 : vector<16x16xf32>, vector<16x16xf32> -> vector<32x16xf32>
    %162 = vector.extract_strided_slice %43 {offsets = [304, 0], sizes = [16, 32], strides = [1, 1]} : vector<400x32xf32> to vector<16x32xf32>
    %cst_45 = arith.constant dense<0.000000e+00> : vector<32x32xf32>
    %163 = tpu.matmul %161, %162, %cst_45 {dimension_numbers = #tpu.dot_dimension_numbers<[1], [0], [0], [1], [0, 0, 1, 1], [], []>} : vector<32x16xf32>, vector<16x32xf32>, vector<32x32xf32> -> vector<32x32xf32>
    %164 = arith.addf %158, %163 : vector<32x32xf32>
    %165 = vector.extract_strided_slice %40 {offsets = [320, 0], sizes = [16, 16], strides = [1, 1]} : vector<400x16xf32> to vector<16x16xf32>
    %166 = vector.extract_strided_slice %42 {offsets = [320, 0], sizes = [16, 16], strides = [1, 1]} : vector<400x16xf32> to vector<16x16xf32>
    %167 = tpu.concatenate %165, %166 in 0 : vector<16x16xf32>, vector<16x16xf32> -> vector<32x16xf32>
    %168 = vector.extract_strided_slice %43 {offsets = [320, 0], sizes = [16, 32], strides = [1, 1]} : vector<400x32xf32> to vector<16x32xf32>
    %cst_46 = arith.constant dense<0.000000e+00> : vector<32x32xf32>
    %169 = tpu.matmul %167, %168, %cst_46 {dimension_numbers = #tpu.dot_dimension_numbers<[1], [0], [0], [1], [0, 0, 1, 1], [], []>} : vector<32x16xf32>, vector<16x32xf32>, vector<32x32xf32> -> vector<32x32xf32>
    %170 = arith.addf %164, %169 : vector<32x32xf32>
    %171 = vector.extract_strided_slice %40 {offsets = [336, 0], sizes = [16, 16], strides = [1, 1]} : vector<400x16xf32> to vector<16x16xf32>
    %172 = vector.extract_strided_slice %42 {offsets = [336, 0], sizes = [16, 16], strides = [1, 1]} : vector<400x16xf32> to vector<16x16xf32>
    %173 = tpu.concatenate %171, %172 in 0 : vector<16x16xf32>, vector<16x16xf32> -> vector<32x16xf32>
    %174 = vector.extract_strided_slice %43 {offsets = [336, 0], sizes = [16, 32], strides = [1, 1]} : vector<400x32xf32> to vector<16x32xf32>
    %cst_47 = arith.constant dense<0.000000e+00> : vector<32x32xf32>
    %175 = tpu.matmul %173, %174, %cst_47 {dimension_numbers = #tpu.dot_dimension_numbers<[1], [0], [0], [1], [0, 0, 1, 1], [], []>} : vector<32x16xf32>, vector<16x32xf32>, vector<32x32xf32> -> vector<32x32xf32>
    %176 = arith.addf %170, %175 : vector<32x32xf32>
    %177 = vector.extract_strided_slice %40 {offsets = [352, 0], sizes = [16, 16], strides = [1, 1]} : vector<400x16xf32> to vector<16x16xf32>
    %178 = vector.extract_strided_slice %42 {offsets = [352, 0], sizes = [16, 16], strides = [1, 1]} : vector<400x16xf32> to vector<16x16xf32>
    %179 = tpu.concatenate %177, %178 in 0 : vector<16x16xf32>, vector<16x16xf32> -> vector<32x16xf32>
    %180 = vector.extract_strided_slice %43 {offsets = [352, 0], sizes = [16, 32], strides = [1, 1]} : vector<400x32xf32> to vector<16x32xf32>
    %cst_48 = arith.constant dense<0.000000e+00> : vector<32x32xf32>
    %181 = tpu.matmul %179, %180, %cst_48 {dimension_numbers = #tpu.dot_dimension_numbers<[1], [0], [0], [1], [0, 0, 1, 1], [], []>} : vector<32x16xf32>, vector<16x32xf32>, vector<32x32xf32> -> vector<32x32xf32>
    %182 = arith.addf %176, %181 : vector<32x32xf32>
    %183 = vector.extract_strided_slice %40 {offsets = [368, 0], sizes = [16, 16], strides = [1, 1]} : vector<400x16xf32> to vector<16x16xf32>
    %184 = vector.extract_strided_slice %42 {offsets = [368, 0], sizes = [16, 16], strides = [1, 1]} : vector<400x16xf32> to vector<16x16xf32>
    %185 = tpu.concatenate %183, %184 in 0 : vector<16x16xf32>, vector<16x16xf32> -> vector<32x16xf32>
    %186 = vector.extract_strided_slice %43 {offsets = [368, 0], sizes = [16, 32], strides = [1, 1]} : vector<400x32xf32> to vector<16x32xf32>
    %cst_49 = arith.constant dense<0.000000e+00> : vector<32x32xf32>
    %187 = tpu.matmul %185, %186, %cst_49 {dimension_numbers = #tpu.dot_dimension_numbers<[1], [0], [0], [1], [0, 0, 1, 1], [], []>} : vector<32x16xf32>, vector<16x32xf32>, vector<32x32xf32> -> vector<32x32xf32>
    %188 = arith.addf %182, %187 : vector<32x32xf32>
    %189 = vector.extract_strided_slice %40 {offsets = [384, 0], sizes = [16, 16], strides = [1, 1]} : vector<400x16xf32> to vector<16x16xf32>
    %190 = vector.extract_strided_slice %42 {offsets = [384, 0], sizes = [16, 16], strides = [1, 1]} : vector<400x16xf32> to vector<16x16xf32>
    %191 = tpu.concatenate %189, %190 in 0 : vector<16x16xf32>, vector<16x16xf32> -> vector<32x16xf32>
    %192 = vector.extract_strided_slice %43 {offsets = [384, 0], sizes = [16, 32], strides = [1, 1]} : vector<400x32xf32> to vector<16x32xf32>
    %cst_50 = arith.constant dense<0.000000e+00> : vector<32x32xf32>
    %193 = tpu.matmul %191, %192, %cst_50 {dimension_numbers = #tpu.dot_dimension_numbers<[1], [0], [0], [1], [0, 0, 1, 1], [], []>} : vector<32x16xf32>, vector<16x32xf32>, vector<32x32xf32> -> vector<32x32xf32>
    %194 = arith.addf %188, %193 : vector<32x32xf32>
    %195 = vector.broadcast %3 : vector<1x32xf32> to vector<32x32xf32>
    %196 = arith.addf %194, %195 : vector<32x32xf32>
    %cst_51 = arith.constant 0.000000e+00 : f32
    %197 = vector.broadcast %cst_51 : f32 to vector<32x32xf32>
    %198 = arith.maximumf %196, %197 : vector<32x32xf32>
    %cst_52 = arith.constant dense<0.000000e+00> : vector<32xf32>
    %199 = vector.multi_reduction <add>, %198, %cst_52 [0] : vector<32x32xf32> to vector<32xf32>
    %200 = vector.shape_cast %199 : vector<32xf32> to vector<1x32xf32>
    %cst_53 = arith.constant 3.200000e+01 : f32
    %201 = vector.broadcast %cst_53 : f32 to vector<1x32xf32>
    %202 = arith.divf %200, %201 : vector<1x32xf32>
    %203 = arith.mulf %198, %198 : vector<32x32xf32>
    %cst_54 = arith.constant dense<0.000000e+00> : vector<32xf32>
    %204 = vector.multi_reduction <add>, %203, %cst_54 [0] : vector<32x32xf32> to vector<32xf32>
    %205 = vector.shape_cast %204 : vector<32xf32> to vector<1x32xf32>
    %cst_55 = arith.constant 3.200000e+01 : f32
    %206 = vector.broadcast %cst_55 : f32 to vector<1x32xf32>
    %207 = arith.divf %205, %206 : vector<1x32xf32>
    %208 = arith.mulf %202, %202 : vector<1x32xf32>
    %209 = arith.subf %207, %208 : vector<1x32xf32>
    %cst_56 = arith.constant 0.000000e+00 : f32
    %210 = vector.broadcast %cst_56 : f32 to vector<1x32xf32>
    %211 = arith.maximumf %209, %210 : vector<1x32xf32>
    %cst_57 = arith.constant 9.99999974E-6 : f32
    %212 = vector.broadcast %cst_57 : f32 to vector<1x32xf32>
    %213 = arith.addf %211, %212 : vector<1x32xf32>
    %214 = math.rsqrt %213 : vector<1x32xf32>
    %215 = arith.mulf %4, %214 : vector<1x32xf32>
    %216 = vector.broadcast %215 : vector<1x32xf32> to vector<32x32xf32>
    %217 = arith.mulf %198, %216 : vector<32x32xf32>
    %218 = arith.mulf %202, %215 : vector<1x32xf32>
    %219 = arith.subf %5, %218 : vector<1x32xf32>
    %220 = vector.broadcast %219 : vector<1x32xf32> to vector<32x32xf32>
    %221 = arith.addf %217, %220 : vector<32x32xf32>
    %222 = vector.extract_strided_slice %221 {offsets = [0, 0], sizes = [16, 32], strides = [1, 1]} : vector<32x32xf32> to vector<16x32xf32>
    %cst_58 = arith.constant dense<0.000000e+00> : vector<32xf32>
    %223 = vector.multi_reduction <add>, %222, %cst_58 [0] : vector<16x32xf32> to vector<32xf32>
    %224 = vector.shape_cast %223 : vector<32xf32> to vector<1x32xf32>
    %225 = vector.extract_strided_slice %221 {offsets = [16, 0], sizes = [16, 32], strides = [1, 1]} : vector<32x32xf32> to vector<16x32xf32>
    %cst_59 = arith.constant dense<0.000000e+00> : vector<32xf32>
    %226 = vector.multi_reduction <add>, %225, %cst_59 [0] : vector<16x32xf32> to vector<32xf32>
    %227 = vector.shape_cast %226 : vector<32xf32> to vector<1x32xf32>
    %228 = tpu.concatenate %224, %227 in 0 : vector<1x32xf32>, vector<1x32xf32> -> vector<2x32xf32>
    %cst_60 = arith.constant 6.250000e-02 : f32
    %229 = vector.broadcast %cst_60 : f32 to vector<2x32xf32>
    %230 = arith.mulf %228, %229 : vector<2x32xf32>
    %cst_61 = arith.constant dense<0.000000e+00> : vector<2x2xf32>
    %231 = tpu.matmul %230, %6, %cst_61 {dimension_numbers = #tpu.dot_dimension_numbers<[1], [1], [0], [0], [0, 0, 1, 0], [], []>} : vector<2x32xf32>, vector<2x32xf32>, vector<2x2xf32> -> vector<2x2xf32>
    %c0_62 = arith.constant 0 : index
    %c0_63 = arith.constant 0 : index
    %232 = vector.load %arg5[%c0_62, %c0_63] : memref<2x2xf32, #tpu.memory_space<vmem>>, vector<2x2xf32>
    tpu.vector_store %arg5[%c0_62, %c0_63], %231 {strides = array<i32>} : memref<2x2xf32, #tpu.memory_space<vmem>>, vector<2x2xf32>,
    return
  }
}

</mosaic_0001>

<bundles_post_ra>
// kernel: convnet_forward.1
= control target key start
LH: loop header
LB: loop body
LE: loop exit
PB: predicated region body
PF: predicated region fallthrough
CT: control target
= control target key end

     0   :  { %vm51_vm0 = vcmask 457728   ;;  %s6771_s0 = inlined_call_operand.vmem [shape: f32[128,56], index: 0, kind: input, shape index: {}]   ;;  %s6772_s1 = inlined_call_operand.vmem [shape: f32[56,16], index: 1, kind: input, shape index: {}]   ;;  %s6773_s2 = inlined_call_operand.vmem [shape: bf16[400,64], index: 2, kind: input, shape index: {}]   ;;  %s6774_s3 = inlined_call_operand.vmem [shape: f32[400,32], index: 3, kind: input, shape index: {}]   ;;  %s6775_s4 = inlined_call_operand.vmem [shape: f32[8,128], index: 4, kind: input, shape index: {}]   ;;  %s6776_s5 = inlined_call_operand.hbm [shape: f32[2,2], index: 5, kind: output, shape index: {}]  }
   0x1   :  { %v40_v0 = vld [vmem:[%s6772_s1] sm:$0xff]  ;;  %v41_v1 = vld [vmem:[%s6772_s1 + $0x8] sm:$0xff]  ;;  %v42_v2 = vld [vmem:[%s6772_s1 + $0x10] sm:$0xff] }
   0x2   :  { %v5182_v3 = vpack.c.bf16 %v41_v1, %v40_v0  ;;  %v43_v4 = vld [vmem:[%s6772_s1 + $0x18] sm:$0xff]  ;;  %v44_v6 = vld [vmem:[%s6772_s1 + $0x20] sm:$0xff]  ;;  %v45_v7 = vld [vmem:[%s6772_s1 + $0x28] sm:$0xff] }
   0x3   :  { %v5186_v5 = vpack.c.bf16 %v43_v4, %v42_v2  ;;  %v24_v8 = vld [vmem:[%s6771_s0] sm:$0xff]  ;;  %v5190_v9 = vpack.c.bf16 %v45_v7, %v44_v6 }
   0x4   :  { %5183 = vmatprep.subr.bf16.mxu0 %v5182_v3  ;;  %4721 = vmatprep.mubr.msk.f32.mxu0 %vm51_vm0, %v24_v8 }
   0x5   :  { %5185 = vmatpush3.bf16.msra.mxu0 %v5182_v3 }
   0x6   :  { %5187 = vmatprep.subr.bf16.mxu0 %v5186_v5 }
   0x9   :  { %5189 = vmatpush3.bf16.msra.mxu0 %v5186_v5 }
   0xa   :  { %10 = vsyncpa [#allocation3], 0  ;;  %5191 = vmatprep.subr.bf16.mxu0 %v5190_v9  ;;  %v46_v10 = vld [vmem:[%s6772_s1 + $0x30] sm:$0xff]  ;;  %v25_v11 = vld [vmem:[%s6771_s0 + $0x8] sm:$0xff]  ;;  %v47_v26 = vlaneseq  ;;  %vm261_vm1 = vcmask 130048   ;;  %s5469_s1 = smov 112  }
   0xb   :  { %v26_v12 = vld [vmem:[%s6771_s0 + $0x10] sm:$0xff]  ;;  %v27_v13 = vld [vmem:[%s6771_s0 + $0x18] sm:$0xff]  ;;  %v28_v14 = vld [vmem:[%s6771_s0 + $0x20] sm:$0xff]  ;;  %s5470_s15 = smov 32   ;;  %s5471_s16 = smov 96   ;;  %vm523_vm2 = vcmask 523264  }
   0xc   :  { %v29_v15 = vld [vmem:[%s6771_s0 + $0x28] sm:$0xff]  ;;  %v30_v16 = vld [vmem:[%s6771_s0 + $0x30] sm:$0xff]  ;;  %v31_v17 = vld [vmem:[%s6771_s0 + $0x38] sm:$0xff]  ;;  %v48_v27 = vshrl.u32 %v47_v26, 7  ;;  %vm3883_vm3 = vcmask 261120   ;;  %s5472_s14 = smov 64  }
   0xd   :  { %5193 = vmatpush3.bf16.msra.mxu0 %v5190_v9  ;;  %v32_v18 = vld [vmem:[%s6771_s0 + $0x40] sm:$0xff]  ;;  %v33_v19 = vld [vmem:[%s6771_s0 + $0x48] sm:$0xff]  ;;  %v34_v20 = vld [vmem:[%s6771_s0 + $0x50] sm:$0xff]  ;;  %vm5474_vm4 = vmmov 0   ;;  %vm3979_vm5 = vcmask 1040384   ;;  %vm4058_vm6 = vcmask 9216  }
   0xe   :  { %4719 = vmatprep.subr.mxu0 %v46_v10  ;;  %v35_v21 = vld [vmem:[%s6771_s0 + $0x58] sm:$0xff]  ;;  %v36_v22 = vld [vmem:[%s6771_s0 + $0x60] sm:$0xff]  ;;  %v37_v23 = vld [vmem:[%s6771_s0 + $0x68] sm:$0xff]  ;;  %v5591_v28 = vsub.s32 0, %v48_v27 }
   0xf   :  { %v38_v24 = vld [vmem:[%s6771_s0 + $0x70] sm:$0xff]  ;;  %v39_v25 = vld [vmem:[%s6771_s0 + $0x78] sm:$0xff]  ;;  %v5596_v29 = vld [vmem:[%s6775_s4] sm:$0x1]  ;;  %s5468_s0 = smov 16  }
  0x10   :  { %v5600_v30 = vrot.slane %v5596_v29, %v5591_v28 }
  0x11   :  { %4720 = vmatpush3.msra.mxu0 %v46_v10 }
  0x12   :  { %4722 = vmatmul.mubr.msk.f32.vlgmr.msra.gmra.mrb[0].mxu0 %vm51_vm0, %v25_v11 }
  0x13   :  { %4724 = vmatprep.mubr.msk.f32.mxu0 %vm51_vm0, %v26_v12 }
  0x16   :  { %4725 = vmatmul.mubr.msk.f32.gmra.mrb[2].mxu0 %vm51_vm0, %v27_v13 }
  0x17   :  { %4727 = vmatprep.mubr.msk.f32.mxu0 %vm51_vm0, %v28_v14 }
  0x1a   :  { %4728 = vmatmul.mubr.msk.f32.gmra.mrb[4].mxu0 %vm51_vm0, %v29_v15 }
  0x1b   :  { %4730 = vmatprep.mubr.msk.f32.mxu0 %vm51_vm0, %v30_v16 }
  0x1e   :  { %4731 = vmatmul.mubr.msk.f32.gmra.mrb[6].mxu0 %vm51_vm0, %v31_v17 }
  0x1f   :  { %4733 = vmatprep.mubr.msk.f32.mxu0 %vm51_vm0, %v32_v18 }
  0x22   :  { %4734 = vmatmul.mubr.msk.f32.gmra.mrb[8].mxu0 %vm51_vm0, %v33_v19 }
  0x23   :  { %4736 = vmatprep.mubr.msk.f32.mxu0 %vm51_vm0, %v34_v20 }
  0x26   :  { %4737 = vmatmul.mubr.msk.f32.gmra.mrb[10].mxu0 %vm51_vm0, %v35_v21 }
  0x27   :  { %4739 = vmatprep.mubr.msk.f32.mxu0 %vm51_vm0, %v36_v22 }
  0x2a   :  { %4740 = vmatmul.mubr.msk.f32.gmra.mrb[12].mxu0 %vm51_vm0, %v37_v23 }
  0x2b   :  { %4742 = vmatprep.mubr.msk.f32.mxu0 %vm51_vm0, %v38_v24 }
  0x2e   :  { %4743 = vmatmul.mubr.msk.f32.gmra.mrb[14].mxu0 %vm51_vm0, %v39_v25 }
  0xe5   :  { %v4723_v31 = vpop.f32.mrb[0].mxu0 }
  0xe6   :  { %v172_v32 = vadd.f32 %v4723_v31, %v5600_v30  ;;  %v166_v33 = vpop.f32.mrb[1].mxu0 }
  0xe7   :  { %v167_v34 = vadd.f32 %v166_v33, %v5600_v30 }
  0xe8   :  { %v5604_v35 = vmax.f32 %v172_v32, 0.0 }
  0xe9   :  { %v5606_v36 = vmax.f32 %v167_v34, 0.0  ;;  %v4726_v37 = vpop.f32.mrb[2].mxu0 }
  0xea   :  { %v302_v38 = vmul.f32 %v5604_v35, %v5604_v35  ;;  %v182_v39 = vadd.f32 %v4726_v37, %v5600_v30  ;;  %v176_v40 = vpop.f32.mrb[3].mxu0  ;;  %v263_v41 = vsel %vm261_vm1, %v5604_v35, 0.0 }
  0xeb   :  { %v262_v42 = vsel %vm261_vm1, %v5606_v36, 0.0  ;;  %v301_v43 = vmul.f32 %v5606_v36, %v5606_v36  ;;  %v177_v44 = vadd.f32 %v176_v40, %v5600_v30 }
  0xec   :  { %v5618_v45 = vmax.f32 %v182_v39, 0.0  ;;  %v318_v46 = vsel %vm261_vm1, %v302_v38, 0.0  ;;  %v264_v50 = vadd.f32 %v263_v41, %v262_v42 }
  0xed   :  { %v317_v47 = vsel %vm261_vm1, %v301_v43, 0.0  ;;  %v5622_v48 = vmax.f32 %v177_v44, 0.0  ;;  %v4729_v49 = vpop.f32.mrb[4].mxu0 }
  0xee   :  { %v304_v51 = vmul.f32 %v5618_v45, %v5618_v45  ;;  %v192_v52 = vadd.f32 %v4729_v49, %v5600_v30  ;;  %v186_v53 = vpop.f32.mrb[5].mxu0  ;;  %v319_v57 = vadd.f32 %v318_v46, %v317_v47  ;;  %v267_v60 = vsel %vm261_vm1, %v5618_v45, 0.0 }
  0xef   :  { %v265_v54 = vsel %vm261_vm1, %v5622_v48, 0.0  ;;  %v303_v55 = vmul.f32 %v5622_v48, %v5622_v48  ;;  %v187_v56 = vadd.f32 %v186_v53, %v5600_v30 }
  0xf0   :  { %v266_v58 = vadd.f32 %v265_v54, %v264_v50  ;;  %v5632_v59 = vmax.f32 %v192_v52, 0.0  ;;  %v322_v0 = vsel %vm261_vm1, %v304_v51, 0.0 }
  0xf1   :  { %v320_v61 = vsel %vm261_vm1, %v303_v55, 0.0  ;;  %v5637_v62 = vmax.f32 %v187_v56, 0.0  ;;  %v4732_v63 = vpop.f32.mrb[6].mxu0 }
  0xf2   :  { %v321_v1 = vadd.f32 %v320_v61, %v319_v57  ;;  %v306_v2 = vmul.f32 %v5632_v59, %v5632_v59  ;;  %v268_v3 = vadd.f32 %v267_v60, %v266_v58  ;;  %v196_v4 = vpop.f32.mrb[7].mxu0  ;;  %v202_v7 = vadd.f32 %v4732_v63, %v5600_v30 }
  0xf3   :  { %v269_v5 = vsel %vm261_vm1, %v5637_v62, 0.0  ;;  %v305_v6 = vmul.f32 %v5637_v62, %v5637_v62  ;;  %v197_v8 = vadd.f32 %v196_v4, %v5600_v30  ;;  %v271_v11 = vsel %vm261_vm1, %v5632_v59, 0.0 }
  0xf4   :  { %v270_v9 = vadd.f32 %v269_v5, %v268_v3  ;;  %v323_v10 = vadd.f32 %v322_v0, %v321_v1  ;;  %v5651_v13 = vmax.f32 %v202_v7, 0.0  ;;  %v326_v20 = vsel %vm261_vm1, %v306_v2, 0.0 }
  0xf5   :  { %v324_v12 = vsel %vm261_vm1, %v305_v6, 0.0  ;;  %v5653_v14 = vmax.f32 %v197_v8, 0.0  ;;  %v4735_v15 = vpop.f32.mrb[8].mxu0 }
  0xf6   :  { %v325_v16 = vadd.f32 %v324_v12, %v323_v10  ;;  %v272_v17 = vadd.f32 %v271_v11, %v270_v9  ;;  %v212_v18 = vadd.f32 %v4735_v15, %v5600_v30  ;;  %v206_v19 = vpop.f32.mrb[9].mxu0  ;;  %v308_v21 = vmul.f32 %v5651_v13, %v5651_v13 }
  0xf7   :  { %v273_v22 = vsel %vm261_vm1, %v5653_v14, 0.0  ;;  %v307_v23 = vmul.f32 %v5653_v14, %v5653_v14  ;;  %v207_v27 = vadd.f32 %v206_v19, %v5600_v30  ;;  %v275_v33 = vsel %vm261_vm1, %v5651_v13, 0.0 }
  0xf8   :  { %v274_v24 = vadd.f32 %v273_v22, %v272_v17  ;;  %v327_v25 = vadd.f32 %v326_v20, %v325_v16  ;;  %v5663_v26 = vmax.f32 %v212_v18, 0.0  ;;  %v330_v34 = vsel %vm261_vm1, %v308_v21, 0.0 }
  0xf9   :  { %v328_v31 = vsel %vm261_vm1, %v307_v23, 0.0  ;;  %v4738_v32 = vpop.f32.mrb[10].mxu0  ;;  %v5670_v38 = vmax.f32 %v207_v27, 0.0 }
  0xfa   :  { %v329_v37 = vadd.f32 %v328_v31, %v327_v25  ;;  %v216_v39 = vpop.f32.mrb[11].mxu0  ;;  %v310_v40 = vmul.f32 %v5663_v26, %v5663_v26  ;;  %v276_v41 = vadd.f32 %v275_v33, %v274_v24  ;;  %v222_v42 = vadd.f32 %v4738_v32, %v5600_v30 }
  0xfb   :  { %v217_v43 = vadd.f32 %v216_v39, %v5600_v30  ;;  %v277_v44 = vsel %vm261_vm1, %v5670_v38, 0.0  ;;  %v309_v46 = vmul.f32 %v5670_v38, %v5670_v38  ;;  %v279_v53 = vsel %vm261_vm1, %v5663_v26, 0.0 }
  0xfc   :  { %v331_v47 = vadd.f32 %v330_v34, %v329_v37  ;;  %v278_v49 = vadd.f32 %v277_v44, %v276_v41  ;;  %v5680_v50 = vmax.f32 %v222_v42, 0.0  ;;  %v334_v57 = vsel %vm261_vm1, %v310_v40, 0.0 }
  0xfd   :  { %v5682_v51 = vmax.f32 %v217_v43, 0.0  ;;  %v4741_v52 = vpop.f32.mrb[12].mxu0  ;;  %v332_v54 = vsel %vm261_vm1, %v309_v46, 0.0 }
  0xfe   :  { %v232_v55 = vadd.f32 %v4741_v52, %v5600_v30  ;;  %v226_v56 = vpop.f32.mrb[13].mxu0  ;;  %v333_v58 = vadd.f32 %v332_v54, %v331_v47  ;;  %v312_v60 = vmul.f32 %v5680_v50, %v5680_v50  ;;  %v280_v61 = vadd.f32 %v279_v53, %v278_v49 }
  0xff   :  { %v281_v63 = vsel %vm261_vm1, %v5682_v51, 0.0  ;;  %v311_v0 = vmul.f32 %v5682_v51, %v5682_v51  ;;  %v227_v2 = vadd.f32 %v226_v56, %v5600_v30  ;;  %v283_v6 = vsel %vm261_vm1, %v5680_v50, 0.0 }
 0x100   :  { %v5695_v1 = vmax.f32 %v232_v55, 0.0  ;;  %v282_v3 = vadd.f32 %v281_v63, %v280_v61  ;;  %v335_v4 = vadd.f32 %v334_v57, %v333_v58  ;;  %v338_v16 = vsel %vm261_vm1, %v312_v60, 0.0 }
 0x101   :  { %v4744_v5 = vpop.f32.mrb[14].mxu0  ;;  %v336_v7 = vsel %vm261_vm1, %v311_v0, 0.0  ;;  %v5701_v8 = vmax.f32 %v227_v2, 0.0 }
 0x102   :  { %v236_v9 = vpop.f32.mrb[15].mxu0  ;;  %v337_v10 = vadd.f32 %v336_v7, %v335_v4  ;;  %v284_v11 = vadd.f32 %v283_v6, %v282_v3  ;;  %v242_v12 = vadd.f32 %v4744_v5, %v5600_v30  ;;  %v314_v17 = vmul.f32 %v5695_v1, %v5695_v1 }
 0x103   :  { %v237_v15 = vadd.f32 %v236_v9, %v5600_v30  ;;  %v285_v18 = vsel %vm261_vm1, %v5701_v8, 0.0  ;;  %v313_v19 = vmul.f32 %v5701_v8, %v5701_v8  ;;  %v287_v30 = vsel %vm261_vm1, %v5695_v1, 0.0 }
 0x104   :  { %v286_v20 = vadd.f32 %v285_v18, %v284_v11  ;;  %v339_v21 = vadd.f32 %v338_v16, %v337_v10  ;;  %v5712_v22 = vmax.f32 %v242_v12, 0.0  ;;  %v342_v31 = vsel %vm261_vm1, %v314_v17, 0.0 }
 0x105   :  { %v5714_v23 = vmax.f32 %v237_v15, 0.0  ;;  %v340_v24 = vsel %vm261_vm1, %v313_v19, 0.0  ;;  %v5739_v19 = vld [vmem:[%s6773_s2] sm:$0xff]  }
 0x106   :  { %v341_v25 = vadd.f32 %v340_v24, %v339_v21  ;;  %v288_v27 = vadd.f32 %v287_v30, %v286_v20  ;;  %v316_v32 = vmul.f32 %v5712_v22, %v5712_v22  ;;  %v291_v40 = vsel %vm261_vm1, %v5712_v22, 0.0 }
 0x107   :  { %v289_v33 = vsel %vm261_vm1, %v5714_v23, 0.0  ;;  %v315_v34 = vmul.f32 %v5714_v23, %v5714_v23  ;;  %v4294_v20 = vunpack.c.l.bf16 %v5739_v19 }
 0x108   :  { %v290_v37 = vadd.f32 %v289_v33, %v288_v27  ;;  %v343_v39 = vadd.f32 %v342_v31, %v341_v25  ;;  %v346_v44 = vsel %vm261_vm1, %v316_v32, 0.0 }
 0x109   :  { %v344_v41 = vsel %vm261_vm1, %v315_v34, 0.0  ;;  %4761 = vmatprep.mubr.msk.f32.mxu0 %vm523_vm2, %v4294_v20 }
 0x10a   :  { %v292_v42 = vadd.f32 %v291_v40, %v290_v37  ;;  %v345_v43 = vadd.f32 %v344_v41, %v343_v39 }
 0x10c   :  { %v293_v46 = vrot.slane %v292_v42, 4  ;;  %v347_v47 = vadd.f32 %v346_v44, %v345_v43 }
 0x10e   :  { %v294_v49 = vadd.f32 %v293_v46, %v292_v42  ;;  %v348_v52 = vrot.slane %v347_v47, 4 }
 0x110   :  { %v295_v53 = vrot.slane %v294_v49, 2  ;;  %v349_v54 = vadd.f32 %v348_v52, %v347_v47  ;;  %v4295_v52 = vunpack.c.h.bf16 %v5739_v19  ;;  %v1306_v19 = vld [vmem:[%s6774_s3 + $0x10] sm:$0xff] }
 0x112   :  { %v296_v55 = vadd.f32 %v295_v53, %v294_v49  ;;  %v350_v56 = vrot.slane %v349_v54, 2 }
 0x114   :  { %v297_v57 = vrot.slane %v296_v55, 1  ;;  %v351_v58 = vadd.f32 %v350_v56, %v349_v54  ;;  %v5799_v56 = vld [vmem:[%s6773_s2 + $0x10] sm:$0xff]  }
 0x116   :  { %v298_v60 = vadd.f32 %v297_v57, %v296_v55  ;;  %v352_v61 = vrot.slane %v351_v58, 1 }
 0x118   :  { %v300_v63 = vmul.f32 0.0078125, %v298_v60  ;;  %v353_v0 = vadd.f32 %v352_v61, %v351_v58 }
 0x11a   :  { %v354_v2 = vmul.f32 0.0078125, %v353_v0  ;;  %v355_v3 = vmul.f32 %v300_v63, %v300_v63  ;;  %v5818_v0 = vld [vmem:[%s6773_s2 + $0x18] sm:$0xff]  }
 0x11c   :  { %v356_v4 = vsub.f32 %v354_v2, %v355_v3  ;;  %v4303_v3 = vunpack.c.h.bf16 %v5799_v56 }
 0x11e   :  { %v357_v5 = vmax.f32 %v356_v4, 0.0 }
 0x120   :  { %v358_v6 = vadd.f32 1e-05, %v357_v5 }
 0x122   :  { %5440 = vrsqrt.f32 %v358_v6 }
 0x12c   :  { %v5441_v7 = vpop.eup %5440 }
 0x12d   :  { %361 = vrot.lane.b32.xlu0 %v5441_v7, %s5468_s0  ;;  %v4307_v7 = vunpack.c.h.bf16 %v5818_v0 }
 0x19f   :  { %v362_v9 = vpop.permute.xlu0 %361 }
 0x1a0   :  { %v364_v10 = vmul.f32 %v362_v9, %v5596_v29 }
 0x1a2   :  { %390 = vrot.lane.b32.xlu0 %v364_v10, %s5469_s1  ;;  %v368_v15 = vrot.slane %v364_v10, %v5591_v28  ;;  %v5846_v10 = vld [vmem:[%s6773_s2 + $0x28] sm:$0xff]  }
 0x214   :  { %v391_v11 = vpop.permute.xlu0 %390 }
 0x215   :  { %v393_v12 = vmul.f32 %v391_v11, %v300_v63 }
 0x217   :  { %395 = vrot.lane.b32.xlu1 %v393_v12, %s5470_s15  ;;  %v4314_v12 = vunpack.c.l.bf16 %v5846_v10 }
 0x21b   :  { %370 = vrot.lane.b32.xlu1 %v368_v15, %s5469_s1  ;;  %v5859_v15 = vld [vmem:[%s6773_s2 + $0x30] sm:$0xff]  }
 0x289   :  { %v396_v16 = vpop.permute.xlu1 %395 }
 0x28a   :  { %v398_v17 = vsub.f32 %v5596_v29, %v396_v16  ;;  %v4315_v16 = vunpack.c.h.bf16 %v5846_v10 }
 0x28c   :  { %v402_v18 = vrot.slane %v398_v17, %v5591_v28  ;;  %v4318_v17 = vunpack.c.l.bf16 %v5859_v15 }
 0x28d   :  { %v5745_v21 = vpop.permute.xlu1 %370 }
 0x28e   :  { %404 = vrot.lane.b32.xlu0 %v402_v18, %s5471_s16  ;;  %v373_v29 = vmul.f32 %v5745_v21, %v5606_v36  ;;  %v374_v30 = vmul.f32 %v5745_v21, %v5604_v35  ;;  %v375_v24 = vmul.f32 %v5745_v21, %v5622_v48  ;;  %v376_v25 = vmul.f32 %v5745_v21, %v5618_v45  ;;  %v5872_v18 = vld [vmem:[%s6773_s2 + $0x38] sm:$0xff]  }
 0x28f   :  { %v377_v35 = vmul.f32 %v5745_v21, %v5637_v62  ;;  %v378_v48 = vmul.f32 %v5745_v21, %v5632_v59  ;;  %v379_v40 = vmul.f32 %v5745_v21, %v5653_v14  ;;  %v380_v62 = vmul.f32 %v5745_v21, %v5651_v13 }
 0x290   :  { %v381_v43 = vmul.f32 %v5745_v21, %v5670_v38  ;;  %v382_v44 = vmul.f32 %v5745_v21, %v5663_v26  ;;  %v383_v47 = vmul.f32 %v5745_v21, %v5682_v51  ;;  %v384_v49 = vmul.f32 %v5745_v21, %v5680_v50  ;;  %v5786_v38 = vld [vmem:[%s6773_s2 + $0x8] sm:$0xff]  }
 0x291   :  { %v4298_v55 = vunpack.c.l.bf16 %v5786_v38  ;;  %v385_v50 = vmul.f32 %v5745_v21, %v5701_v8  ;;  %v386_v51 = vmul.f32 %v5745_v21, %v5695_v1  ;;  %v4299_v58 = vunpack.c.h.bf16 %v5786_v38 }
 0x292   :  { %v4302_v1 = vunpack.c.l.bf16 %v5799_v56  ;;  %v387_v8 = vmul.f32 %v5745_v21, %v5714_v23  ;;  %v388_v63 = vmul.f32 %v5745_v21, %v5712_v22  ;;  %v4306_v22 = vunpack.c.l.bf16 %v5818_v0  ;;  %v5833_v23 = vld [vmem:[%s6773_s2 + $0x20] sm:$0xff]  }
 0x293   :  { %v4310_v9 = vunpack.c.l.bf16 %v5833_v23  ;;  %v4311_v11 = vunpack.c.h.bf16 %v5833_v23  ;;  %v4319_v21 = vunpack.c.h.bf16 %v5859_v15 }
 0x300   :  { %v5755_v27 = vpop.permute.xlu0 %404 }
 0x301   :  { %v407_v31 = vadd.f32 %v5755_v27, %v373_v29  ;;  %v408_v32 = vadd.f32 %v5755_v27, %v374_v30  ;;  %v409_v33 = vadd.f32 %v5755_v27, %v375_v24  ;;  %v410_v34 = vadd.f32 %v5755_v27, %v376_v25  ;;  %v5885_v30 = vld [vmem:[%s6773_s2 + $0x40] sm:$0xff]  }
 0x302   :  { %v411_v37 = vadd.f32 %v5755_v27, %v377_v35  ;;  %v412_v39 = vadd.f32 %v5755_v27, %v378_v48  ;;  %v413_v59 = vadd.f32 %v5755_v27, %v379_v40  ;;  %v414_v42 = vadd.f32 %v5755_v27, %v380_v62  ;;  %v5943_v40 = vld [vmem:[%s6773_s2 + $0x58] sm:$0xff]  }
 0x303   :  { %v5194_v36 = vpack.c.bf16 %v408_v32, %v407_v31  ;;  %v5198_v45 = vpack.c.bf16 %v410_v34, %v409_v33  ;;  %v415_v14 = vadd.f32 %v5755_v27, %v381_v43  ;;  %v416_v13 = vadd.f32 %v5755_v27, %v382_v44  ;;  %v5907_v32 = vld [vmem:[%s6773_s2 + $0xa0] sm:$0xff]  }
 0x304   :  { %v5202_v41 = vpack.c.bf16 %v412_v39, %v411_v37  ;;  %v5206_v46 = vpack.c.bf16 %v414_v42, %v413_v59  ;;  %v417_v53 = vadd.f32 %v5755_v27, %v383_v47  ;;  %v418_v54 = vadd.f32 %v5755_v27, %v384_v49  ;;  %v5956_v59 = vld [vmem:[%s6773_s2 + $0xb0] sm:$0xff]   ;;  %v5969_v44 = vld [vmem:[%s6773_s2 + $0x60] sm:$0xff]  }
 0x305   :  { %5195 = vmatprep.subr.bf16.mxu0 %v5194_v36  ;;  %5326 = vmatprep.subr.bf16.mxu1 %v5194_v36  ;;  %v5210_v26 = vpack.c.bf16 %v416_v13, %v415_v14  ;;  %v419_v60 = vadd.f32 %v5755_v27, %v385_v50  ;;  %v420_v61 = vadd.f32 %v5755_v27, %v386_v51  ;;  %v4322_v29 = vunpack.c.l.bf16 %v5872_v18  ;;  %v5982_v13 = vld [vmem:[%s6773_s2 + $0xb8] sm:$0xff]   ;;  %v6015_v51 = vld [vmem:[%s6773_s2 + $0x70] sm:$0xff]  }
 0x306   :  { %5197 = vmatpush3.bf16.msra.mxu0 %v5194_v36  ;;  %5330 = vmatpush3.bf16.msra.mxu1 %v5194_v36  ;;  %v5214_v57 = vpack.c.bf16 %v418_v54, %v417_v53  ;;  %v421_v4 = vadd.f32 %v5755_v27, %v387_v8  ;;  %v422_v5 = vadd.f32 %v5755_v27, %v388_v63  ;;  %v4323_v24 = vunpack.c.h.bf16 %v5872_v18  ;;  %v5898_v27 = vld [vmem:[%s6773_s2 + $0x48] sm:$0xff]   ;;  %v5917_v36 = vld [vmem:[%s6773_s2 + $0x50] sm:$0xff]  }
 0x307   :  { %5199 = vmatprep.subr.bf16.mxu0 %v5198_v45  ;;  %5327 = vmatprep.subr.bf16.mxu1 %v5198_v45  ;;  %v5218_v2 = vpack.c.bf16 %v420_v61, %v419_v60  ;;  %v4326_v25 = vunpack.c.l.bf16 %v5885_v30  ;;  %v4327_v31 = vunpack.c.h.bf16 %v5885_v30  ;;  %v4330_v33 = vunpack.c.l.bf16 %v5898_v27  ;;  %v6028_v61 = vld [vmem:[%s6773_s2 + $0x78] sm:$0xff]  }
 0x308   :  { %v5222_v6 = vpack.c.bf16 %v422_v5, %v421_v4  ;;  %v6784_v34 = vunpack.c.l.bf16 %v5907_v32  ;;  %v6783_v35 = vunpack.c.h.bf16 %v5907_v32  ;;  %v4331_v48 = vunpack.c.h.bf16 %v5898_v27 }
 0x309   :  { %v4334_v37 = vunpack.c.l.bf16 %v5917_v36  ;;  %v4338_v42 = vunpack.c.l.bf16 %v5943_v40  ;;  %v6780_v43 = vunpack.c.l.bf16 %v5956_v59  ;;  %v4339_v14 = vunpack.c.h.bf16 %v5943_v40 }
 0x30a   :  { %5201 = vmatpush3.bf16.msra.mxu0 %v5198_v45  ;;  %5331 = vmatpush3.bf16.msra.mxu1 %v5198_v45  ;;  %v5930_v45 = vld [vmem:[%s6773_s2 + $0xa8] sm:$0xff]   ;;  %v4342_v47 = vunpack.c.l.bf16 %v5969_v44  ;;  %v6778_v49 = vunpack.c.l.bf16 %v5982_v13  ;;  %v6777_v53 = vunpack.c.h.bf16 %v5982_v13  ;;  %v4343_v54 = vunpack.c.h.bf16 %v5969_v44 }
 0x30b   :  { %5203 = vmatprep.subr.bf16.mxu0 %v5202_v41  ;;  %5328 = vmatprep.subr.bf16.mxu1 %v5202_v41  ;;  %v6782_v39 = vunpack.c.l.bf16 %v5930_v45  ;;  %v6781_v62 = vunpack.c.h.bf16 %v5930_v45  ;;  %v4350_v60 = vunpack.c.l.bf16 %v6015_v51  ;;  %v4351_v8 = vunpack.c.h.bf16 %v6015_v51 }
 0x30c   :  { %4821 = vmatprep.mubr.msk.f32.mxu1 %vm523_vm2, %v6784_v34  ;;  %v4354_v63 = vunpack.c.l.bf16 %v6028_v61  ;;  %v4355_v4 = vunpack.c.h.bf16 %v6028_v61  ;;  %v6787_v56 = vunpack.c.l.bf16 %v5907_v32  ;;  %v6790_v0 = vunpack.c.h.bf16 %v5930_v45 }
 0x30d   :  { %v6793_v23 = vunpack.c.l.bf16 %v5982_v13 }
 0x30e   :  { %5205 = vmatpush3.bf16.msra.mxu0 %v5202_v41  ;;  %5332 = vmatpush3.bf16.msra.mxu1 %v5202_v41  ;;  %v4335_v41 = vunpack.c.h.bf16 %v5917_v36 }
 0x30f   :  { %5207 = vmatprep.subr.bf16.mxu0 %v5206_v46  ;;  %5329 = vmatprep.subr.bf16.mxu1 %v5206_v46 }
 0x312   :  { %5209 = vmatpush3.bf16.msra.mxu0 %v5206_v46  ;;  %5333 = vmatpush3.bf16.msra.mxu1 %v5206_v46  ;;  %v6779_v46 = vunpack.c.h.bf16 %v5956_v59 }
 0x313   :  { %5211 = vmatprep.subr.bf16.mxu0 %v5210_v26 }
 0x315   :  { %4762 = vmatmul.mubr.msk.f32.vlgmr.msra.gmra.mrb[16].mxu0 %vm523_vm2, %v4295_v52  ;;  %4822 = vmatmul.mubr.msk.f32.vlgmr.msra.gmra.mrb[0].mxu1 %vm523_vm2, %v6783_v35 }
 0x316   :  { %5213 = vmatpush3.bf16.msra.mxu0 %v5210_v26  ;;  %4764 = vmatprep.mubr.msk.f32.mxu0 %vm523_vm2, %v4298_v55  ;;  %v5995_v26 = vld [vmem:[%s6773_s2 + $0x68] sm:$0xff]  }
 0x317   :  { %5215 = vmatprep.subr.bf16.mxu0 %v5214_v57  ;;  %4824 = vmatprep.mubr.msk.f32.mxu1 %vm523_vm2, %v6782_v39  ;;  %v4346_v50 = vunpack.c.l.bf16 %v5995_v26  ;;  %v4410_v39 = vld [vmem:[%s6773_s2 + $0x98] sm:$0xff]  }
 0x318   :  { %v4370_v34 = vunpack.c.l.bf16 %v4410_v39 }
 0x319   :  { %4765 = vmatmul.mubr.msk.f32.gmra.mrb[18].mxu0 %vm523_vm2, %v4299_v58  ;;  %4825 = vmatmul.mubr.msk.f32.gmra.mrb[2].mxu1 %vm523_vm2, %v6781_v62 }
 0x31a   :  { %5217 = vmatpush3.bf16.msra.mxu0 %v5214_v57  ;;  %4767 = vmatprep.mubr.msk.f32.mxu0 %vm523_vm2, %v4302_v1  ;;  %v4347_v57 = vunpack.c.h.bf16 %v5995_v26 }
 0x31b   :  { %5219 = vmatprep.subr.bf16.mxu0 %v5218_v2  ;;  %4827 = vmatprep.mubr.msk.f32.mxu1 %vm523_vm2, %v6780_v43 }
 0x31d   :  { %4768 = vmatmul.mubr.msk.f32.gmra.mrb[20].mxu0 %vm523_vm2, %v4303_v3  ;;  %4828 = vmatmul.mubr.msk.f32.gmra.mrb[4].mxu1 %vm523_vm2, %v6779_v46  ;;  %v6067_v46 = vld [vmem:[%s6773_s2 + $0x90] sm:$0xff]  }
 0x31e   :  { %5221 = vmatpush3.bf16.msra.mxu0 %v5218_v2  ;;  %4770 = vmatprep.mubr.msk.f32.mxu0 %vm523_vm2, %v4306_v22  ;;  %v6041_v2 = vld [vmem:[%s6773_s2 + $0x80] sm:$0xff]   ;;  %v4366_v62 = vunpack.c.l.bf16 %v6067_v46  ;;  %v4367_v35 = vunpack.c.h.bf16 %v6067_v46 }
 0x31f   :  { %5223 = vmatprep.subr.bf16.mxu0 %v5222_v6  ;;  %4830 = vmatprep.mubr.msk.f32.mxu1 %vm523_vm2, %v6778_v49  ;;  %v6785_v5 = vunpack.c.l.bf16 %v6041_v2  ;;  %v6786_v38 = vunpack.c.l.bf16 %v6041_v2 }
 0x321   :  { %4771 = vmatmul.mubr.msk.f32.gmra.mrb[22].mxu0 %vm523_vm2, %v4307_v7  ;;  %4831 = vmatmul.mubr.msk.f32.gmra.mrb[6].mxu1 %vm523_vm2, %v6777_v53  ;;  %v4359_v53 = vunpack.c.h.bf16 %v6041_v2 }
 0x322   :  { %5225 = vmatpush3.bf16.msra.mxu0 %v5222_v6  ;;  %4773 = vmatprep.mubr.msk.f32.mxu0 %vm523_vm2, %v4310_v9  ;;  %v6054_v6 = vld [vmem:[%s6773_s2 + $0x88] sm:$0xff]  }
 0x323   :  { %v4362_v49 = vunpack.c.l.bf16 %v6054_v6  ;;  %v4363_v43 = vunpack.c.h.bf16 %v6054_v6 }
 0x325   :  { %4774 = vmatmul.mubr.msk.f32.gmra.mrb[24].mxu0 %vm523_vm2, %v4311_v11 }
 0x326   :  { %4776 = vmatprep.mubr.msk.f32.mxu0 %vm523_vm2, %v4314_v12 }
 0x329   :  { %4777 = vmatmul.mubr.msk.f32.gmra.mrb[26].mxu0 %vm523_vm2, %v4315_v16 }
 0x32a   :  { %4779 = vmatprep.mubr.msk.f32.mxu0 %vm523_vm2, %v4318_v17 }
 0x32d   :  { %4780 = vmatmul.mubr.msk.f32.gmra.mrb[28].mxu0 %vm523_vm2, %v4319_v21 }
 0x32e   :  { %4782 = vmatprep.mubr.msk.f32.mxu0 %vm523_vm2, %v4322_v29 }
 0x331   :  { %4783 = vmatmul.mubr.msk.f32.gmra.mrb[30].mxu0 %vm523_vm2, %v4323_v24 }
 0x332   :  { %4785 = vmatprep.mubr.msk.f32.mxu0 %vm523_vm2, %v4326_v25 }
 0x335   :  { %4786 = vmatmul.mubr.msk.f32.gmra.mrb[32].mxu0 %vm523_vm2, %v4327_v31 }
 0x336   :  { %4788 = vmatprep.mubr.msk.f32.mxu0 %vm523_vm2, %v4330_v33 }
 0x339   :  { %4789 = vmatmul.mubr.msk.f32.gmra.mrb[34].mxu0 %vm523_vm2, %v4331_v48 }
 0x33a   :  { %4791 = vmatprep.mubr.msk.f32.mxu0 %vm523_vm2, %v4334_v37 }
 0x33d   :  { %4792 = vmatmul.mubr.msk.f32.gmra.mrb[36].mxu0 %vm523_vm2, %v4335_v41 }
 0x33e   :  { %4794 = vmatprep.mubr.msk.f32.mxu0 %vm523_vm2, %v4338_v42 }
 0x341   :  { %4795 = vmatmul.mubr.msk.f32.gmra.mrb[38].mxu0 %vm523_vm2, %v4339_v14 }
 0x342   :  { %4797 = vmatprep.mubr.msk.f32.mxu0 %vm523_vm2, %v4342_v47 }
 0x345   :  { %4798 = vmatmul.mubr.msk.f32.gmra.mrb[40].mxu0 %vm523_vm2, %v4343_v54 }
 0x346   :  { %4800 = vmatprep.mubr.msk.f32.mxu0 %vm523_vm2, %v4346_v50 }
 0x349   :  { %4801 = vmatmul.mubr.msk.f32.gmra.mrb[42].mxu0 %vm523_vm2, %v4347_v57 }
 0x34a   :  { %4803 = vmatprep.mubr.msk.f32.mxu0 %vm523_vm2, %v4350_v60 }
 0x34d   :  { %4804 = vmatmul.mubr.msk.f32.gmra.mrb[44].mxu0 %vm523_vm2, %v4351_v8 }
 0x34e   :  { %4806 = vmatprep.mubr.msk.f32.mxu0 %vm523_vm2, %v4354_v63 }
 0x351   :  { %4807 = vmatmul.mubr.msk.f32.gmra.mrb[46].mxu0 %vm523_vm2, %v4355_v4 }
 0x352   :  { %4809 = vmatprep.mubr.msk.f32.mxu0 %vm523_vm2, %v6785_v5  ;;  %v4371_v5 = vunpack.c.h.bf16 %v4410_v39  ;;  %v6094_v39 = vld [vmem:[%s6773_s2 + $0xc0] sm:$0xff]  }
 0x353   :  { %v4390_v46 = vunpack.c.l.bf16 %v6094_v39 }
 0x355   :  { %4810 = vmatmul.mubr.msk.f32.gmra.mrb[48].mxu0 %vm523_vm2, %v4359_v53  ;;  %4833 = vmatprep.mubr.msk.f32.mxu1 %vm523_vm2, %v4390_v46 }
 0x356   :  { %4812 = vmatprep.mubr.msk.f32.mxu0 %vm523_vm2, %v4362_v49 }
 0x359   :  { %4813 = vmatmul.mubr.msk.f32.gmra.mrb[50].mxu0 %vm523_vm2, %v4363_v43 }
 0x35a   :  { %4815 = vmatprep.mubr.msk.f32.mxu0 %vm523_vm2, %v4366_v62 }
 0x35d   :  { %4816 = vmatmul.mubr.msk.f32.gmra.mrb[52].mxu0 %vm523_vm2, %v4367_v35 }
 0x35e   :  { %4818 = vmatprep.mubr.msk.f32.mxu0 %vm523_vm2, %v4370_v34 }
 0x361   :  { %4819 = vmatmul.mubr.msk.f32.gmra.mrb[54].mxu0 %vm523_vm2, %v4371_v5 }
 0x362   :  { %4852 = vmatprep.mubr.msk.f32.mxu0 %vm523_vm2, %v4294_v20  ;;  %v1307_v20 = vld [vmem:[%s6774_s3 + $0x18] sm:$0xff] }
 0x365   :  { %4853 = vmatmul.mubr.msk.f32.vlgmr.msra.gmra.mrb[56].mxu0 %vm523_vm2, %v4295_v52  ;;  %v4391_v52 = vunpack.c.h.bf16 %v6094_v39 }
 0x366   :  { %4855 = vmatprep.mubr.msk.f32.mxu0 %vm523_vm2, %v4298_v55  ;;  %v5226_v55 = vpack.c.bf16 %v1307_v20, %v1306_v19  ;;  %v1310_v19 = vld [vmem:[%s6774_s3 + $0x30] sm:$0xff]  ;;  %v1311_v20 = vld [vmem:[%s6774_s3 + $0x38] sm:$0xff] }
 0x367   :  { %4834 = vmatmul.mubr.msk.f32.gmra.mrb[8].mxu1 %vm523_vm2, %v4391_v52 }
 0x368   :  { %5227 = vmatprep.subr.bf16.mxu0 %v5226_v55  ;;  %5334 = vmatprep.subr.bf16.mxu1 %v5226_v55 }
 0x369   :  { %4856 = vmatmul.mubr.msk.f32.gmra.mrb[58].mxu0 %vm523_vm2, %v4299_v58  ;;  %5335 = vmatpush3.bf16.msra.mxu1 %v5226_v55  ;;  %v6788_v58 = vunpack.c.h.bf16 %v5907_v32 }
 0x36a   :  { %4858 = vmatprep.mubr.msk.f32.mxu0 %vm523_vm2, %v4302_v1  ;;  %5229 = vmatpush3.bf16.msra.mxu0 %v5226_v55  ;;  %v6789_v1 = vunpack.c.l.bf16 %v5930_v45 }
 0x36d   :  { %4859 = vmatmul.mubr.msk.f32.gmra.mrb[60].mxu0 %vm523_vm2, %v4303_v3  ;;  %v6791_v3 = vunpack.c.l.bf16 %v5956_v59 }
 0x36e   :  { %4861 = vmatprep.mubr.msk.f32.mxu0 %vm523_vm2, %v4306_v22  ;;  %v6792_v22 = vunpack.c.h.bf16 %v5956_v59 }
 0x371   :  { %4862 = vmatmul.mubr.msk.f32.gmra.mrb[62].mxu0 %vm523_vm2, %v4307_v7  ;;  %v1304_v7 = vld [vmem:[%s6774_s3] sm:$0xff] }
 0x372   :  { %4864 = vmatprep.mubr.msk.f32.mxu0 %vm523_vm2, %v4310_v9  ;;  %v1305_v9 = vld [vmem:[%s6774_s3 + $0x8] sm:$0xff] }
 0x373   :  { %v5230_v10 = vpack.c.bf16 %v1305_v9, %v1304_v7 }
 0x375   :  { %4865 = vmatmul.mubr.msk.f32.gmra.mrb[64].mxu0 %vm523_vm2, %v4311_v11  ;;  %v6794_v11 = vunpack.c.h.bf16 %v5982_v13  ;;  %5231 = vmatprep.subr.bf16.mxu1 %v5230_v10 }
 0x376   :  { %4867 = vmatprep.mubr.msk.f32.mxu0 %vm523_vm2, %v4314_v12 }
 0x379   :  { %4868 = vmatmul.mubr.msk.f32.gmra.mrb[66].mxu0 %vm523_vm2, %v4315_v16 }
 0x37a   :  { %4870 = vmatprep.mubr.msk.f32.mxu0 %vm523_vm2, %v4318_v17 }
 0x37d   :  { %4871 = vmatmul.mubr.msk.f32.gmra.mrb[68].mxu0 %vm523_vm2, %v4319_v21 }
 0x37e   :  { %4873 = vmatprep.mubr.msk.f32.mxu0 %vm523_vm2, %v4322_v29 }
 0x381   :  { %4874 = vmatmul.mubr.msk.f32.gmra.mrb[70].mxu0 %vm523_vm2, %v4323_v24 }
 0x382   :  { %4876 = vmatprep.mubr.msk.f32.mxu0 %vm523_vm2, %v4326_v25 }
 0x385   :  { %4877 = vmatmul.mubr.msk.f32.gmra.mrb[72].mxu0 %vm523_vm2, %v4327_v31 }
 0x386   :  { %4879 = vmatprep.mubr.msk.f32.mxu0 %vm523_vm2, %v4330_v33 }
 0x389   :  { %4880 = vmatmul.mubr.msk.f32.gmra.mrb[74].mxu0 %vm523_vm2, %v4331_v48 }
 0x38a   :  { %4882 = vmatprep.mubr.msk.f32.mxu0 %vm523_vm2, %v4334_v37 }
 0x38d   :  { %4883 = vmatmul.mubr.msk.f32.gmra.mrb[76].mxu0 %vm523_vm2, %v4335_v41 }
 0x38e   :  { %4885 = vmatprep.mubr.msk.f32.mxu0 %vm523_vm2, %v4338_v42 }
 0x391   :  { %4886 = vmatmul.mubr.msk.f32.gmra.mrb[78].mxu0 %vm523_vm2, %v4339_v14 }
 0x392   :  { %4888 = vmatprep.mubr.msk.f32.mxu0 %vm523_vm2, %v4342_v47 }
 0x395   :  { %4889 = vmatmul.mubr.msk.f32.gmra.mrb[80].mxu0 %vm523_vm2, %v4343_v54 }
 0x396   :  { %4891 = vmatprep.mubr.msk.f32.mxu0 %vm523_vm2, %v4346_v50 }
 0x399   :  { %4892 = vmatmul.mubr.msk.f32.gmra.mrb[82].mxu0 %vm523_vm2, %v4347_v57 }
 0x39a   :  { %4894 = vmatprep.mubr.msk.f32.mxu0 %vm523_vm2, %v4350_v60 }
 0x39d   :  { %4895 = vmatmul.mubr.msk.f32.gmra.mrb[84].mxu0 %vm523_vm2, %v4351_v8 }
 0x39e   :  { %4897 = vmatprep.mubr.msk.f32.mxu0 %vm523_vm2, %v4354_v63 }
 0x3a1   :  { %4898 = vmatmul.mubr.msk.f32.gmra.mrb[86].mxu0 %vm523_vm2, %v4355_v4  ;;  %v1308_v4 = vld [vmem:[%s6774_s3 + $0x20] sm:$0xff] }
 0x3a2   :  { %4900 = vmatprep.mubr.msk.f32.mxu0 %vm523_vm2, %v6786_v38  ;;  %v5238_v38 = vpack.c.bf16 %v1311_v20, %v1310_v19 }
 0x3a5   :  { %4901 = vmatmul.mubr.msk.f32.gmra.mrb[88].mxu0 %vm523_vm2, %v4359_v53 }
 0x3a6   :  { %4903 = vmatprep.mubr.msk.f32.mxu0 %vm523_vm2, %v4362_v49 }
 0x3a9   :  { %4904 = vmatmul.mubr.msk.f32.gmra.mrb[90].mxu0 %vm523_vm2, %v4363_v43 }
 0x3aa   :  { %4906 = vmatprep.mubr.msk.f32.mxu0 %vm523_vm2, %v4366_v62 }
 0x3ad   :  { %4907 = vmatmul.mubr.msk.f32.gmra.mrb[92].mxu0 %vm523_vm2, %v4367_v35 }
 0x3ae   :  { %4909 = vmatprep.mubr.msk.f32.mxu0 %vm523_vm2, %v4370_v34 }
 0x3b1   :  { %4910 = vmatmul.mubr.msk.f32.gmra.mrb[94].mxu0 %vm523_vm2, %v4371_v5  ;;  %v1309_v5 = vld [vmem:[%s6774_s3 + $0x28] sm:$0xff] }
 0x3b2   :  { %4912 = vmatprep.mubr.msk.f32.mxu0 %vm523_vm2, %v6787_v56 }
 0x3b5   :  { %4913 = vmatmul.mubr.msk.f32.gmra.mrb[96].mxu0 %vm523_vm2, %v6788_v58 }
 0x3b6   :  { %4915 = vmatprep.mubr.msk.f32.mxu0 %vm523_vm2, %v6789_v1  ;;  %v1312_v1 = vld [vmem:[%s6774_s3 + $0x40] sm:$0xff] }
 0x3b9   :  { %4916 = vmatmul.mubr.msk.f32.gmra.mrb[98].mxu0 %vm523_vm2, %v6790_v0  ;;  %v1313_v0 = vld [vmem:[%s6774_s3 + $0x48] sm:$0xff] }
 0x3ba   :  { %4918 = vmatprep.mubr.msk.f32.mxu0 %vm523_vm2, %v6791_v3 }
 0x3bd   :  { %4919 = vmatmul.mubr.msk.f32.gmra.mrb[100].mxu0 %vm523_vm2, %v6792_v22  ;;  %v5242_v22 = vpack.c.bf16 %v1313_v0, %v1312_v1 }
 0x3be   :  { %4921 = vmatprep.mubr.msk.f32.mxu0 %vm523_vm2, %v6793_v23 }
 0x3c1   :  { %4922 = vmatmul.mubr.msk.f32.gmra.mrb[102].mxu0 %vm523_vm2, %v6794_v11  ;;  %v1315_v11 = vld [vmem:[%s6774_s3 + $0x58] sm:$0xff] }
 0x3c2   :  { %4924 = vmatprep.mubr.msk.f32.mxu0 %vm523_vm2, %v4390_v46  ;;  %v5234_v46 = vpack.c.bf16 %v1309_v5, %v1308_v4 }
 0x3c5   :  { %4925 = vmatmul.mubr.msk.f32.gmra.mrb[104].mxu0 %vm523_vm2, %v4391_v52 }
 0x3e8   :  { %v4763_v12 = vpop.f32.mrb[16].mxu0 }
 0x3e9   :  { %v740_v15 = vpop.f32.mrb[17].mxu0 }
 0x3ec   :  { %v4766_v16 = vpop.f32.mrb[18].mxu0 }
 0x3ed   :  { %v750_v17 = vpop.f32.mrb[19].mxu0 }
 0x3ee   :  { %4931 = vmatprep.mubr.msk.f32.mxu0 %vm261_vm1, %v750_v17 }
 0x3ef   :  { %4932 = vmatmul.mubr.msk.f32.vlgmr.msra.gmra.mrb[106].mxu0 %vm261_vm1, %v4766_v16 }
 0x3f0   :  { %v6237_v18 = vpop.f32.mrb[20].mxu0 }
 0x3f1   :  { %v760_v21 = vpop.f32.mrb[21].mxu0 }
 0x3f4   :  { %v6239_v29 = vpop.f32.mrb[22].mxu0 }
 0x3f5   :  { %v6241_v30 = vpop.f32.mrb[23].mxu0 }
 0x3f8   :  { %v6243_v24 = vpop.f32.mrb[24].mxu0 }
 0x3f9   :  { %v6245_v25 = vpop.f32.mrb[25].mxu0 }
 0x3fc   :  { %v6247_v27 = vpop.f32.mrb[26].mxu0 }
 0x3fd   :  { %v6249_v31 = vpop.f32.mrb[27].mxu0 }
 0x400   :  { %v6251_v32 = vpop.f32.mrb[28].mxu0 }
 0x401   :  { %v6253_v33 = vpop.f32.mrb[29].mxu0 }
 0x404   :  { %v6255_v34 = vpop.f32.mrb[30].mxu0 }
 0x405   :  { %v6257_v36 = vpop.f32.mrb[31].mxu0 }
 0x408   :  { %v6259_v35 = vpop.f32.mrb[32].mxu0 }
 0x409   :  { %v6261_v48 = vpop.f32.mrb[33].mxu0 }
 0x40c   :  { %v6263_v45 = vpop.f32.mrb[34].mxu0 }
 0x40d   :  { %v6265_v37 = vpop.f32.mrb[35].mxu0 }
 0x410   :  { %v6267_v40 = vpop.f32.mrb[36].mxu0 }
 0x411   :  { %v6269_v62 = vpop.f32.mrb[37].mxu0 }
 0x414   :  { %v6271_v41 = vpop.f32.mrb[38].mxu0 }
 0x415   :  { %v6273_v59 = vpop.f32.mrb[39].mxu0 }
 0x418   :  { %v6275_v42 = vpop.f32.mrb[40].mxu0 }
 0x419   :  { %v6277_v43 = vpop.f32.mrb[41].mxu0 }
 0x41c   :  { %v6279_v44 = vpop.f32.mrb[42].mxu0 }
 0x41d   :  { %v6281_v14 = vpop.f32.mrb[43].mxu0 }
 0x420   :  { %v6283_v13 = vpop.f32.mrb[44].mxu0 }
 0x421   :  { %v6285_v47 = vpop.f32.mrb[45].mxu0 }
 0x424   :  { %v6287_v49 = vpop.f32.mrb[46].mxu0 }
 0x425   :  { %v6289_v26 = vpop.f32.mrb[47].mxu0 }
 0x428   :  { %v6291_v53 = vpop.f32.mrb[48].mxu0 }
 0x429   :  { %v6293_v54 = vpop.f32.mrb[49].mxu0 }
 0x42c   :  { %v6295_v50 = vpop.f32.mrb[50].mxu0 }
 0x42d   :  { %v6297_v51 = vpop.f32.mrb[51].mxu0 }
 0x430   :  { %v6299_v57 = vpop.f32.mrb[52].mxu0 }
 0x431   :  { %v6301_v60 = vpop.f32.mrb[53].mxu0 }
 0x434   :  { %v6303_v61 = vpop.f32.mrb[54].mxu0 }
 0x435   :  { %v6305_v8 = vpop.f32.mrb[55].mxu0 }
 0x438   :  { %v4854_v63 = vpop.f32.mrb[56].mxu0 }
 0x439   :  { %v1055_v2 = vpop.f32.mrb[57].mxu0 }
 0x43c   :  { %v4857_v6 = vpop.f32.mrb[58].mxu0 }
 0x43d   :  { %v1065_v39 = vpop.f32.mrb[59].mxu0 }
 0x43e   :  { %4934 = vmatprep.mubr.msk.f32.mxu1 %vm261_vm1, %v1065_v39 }
 0x43f   :  { %4935 = vmatmul.mubr.msk.f32.vlgmr.msra.gmra.mrb[10].mxu1 %vm261_vm1, %v4857_v6 }
 0x440   :  { %5233 = vmatpush3.bf16.msra.mxu1 %v5230_v10  ;;  %4941 = vmatprep.mubr.msk.f32.mxu1 %vm261_vm1, %v740_v15  ;;  %v4860_v52 = vpop.f32.mrb[60].mxu0  ;;  %v1314_v10 = vld [vmem:[%s6774_s3 + $0x50] sm:$0xff] }
 0x441   :  { %5235 = vmatprep.subr.bf16.mxu1 %v5234_v46  ;;  %v1075_v55 = vpop.f32.mrb[61].mxu0  ;;  %v5246_v15 = vpack.c.bf16 %v1315_v11, %v1314_v10 }
 0x443   :  { %4942 = vmatmul.mubr.msk.f32.vlgmr.msra.gmra.mrb[12].mxu1 %vm261_vm1, %v4763_v12 }
 0x444   :  { %4944 = vmatprep.mubr.msk.f32.mxu1 %vm261_vm1, %v1055_v2  ;;  %5237 = vmatpush3.bf16.msra.mxu1 %v5234_v46  ;;  %v4863_v56 = vpop.f32.mrb[62].mxu0  ;;  %v1319_v46 = vld [vmem:[%s6774_s3 + $0x78] sm:$0xff] }
 0x445   :  { %5239 = vmatprep.subr.bf16.mxu1 %v5238_v38  ;;  %v1085_v58 = vpop.f32.mrb[63].mxu0 }
 0x447   :  { %4945 = vmatmul.mubr.msk.f32.gmra.mrb[10].mxu1 %vm261_vm1, %v4854_v63  ;;  %v6356_v63 = vpop.f32.mrb[0].mxu1 }
 0x448   :  { %4951 = vmatprep.mubr.msk.f32.mxu1 %vm261_vm1, %v760_v21  ;;  %v4866_v3 = vpop.f32.mrb[64].mxu0  ;;  %v1316_v21 = vld [vmem:[%s6774_s3 + $0x60] sm:$0xff]  ;;  %v6362_v2 = vpop.f32.mrb[1].mxu1 }
 0x449   :  { %v1095_v23 = vpop.f32.mrb[65].mxu0  ;;  %v6378_v19 = vpop.f32.mrb[2].mxu1 }
 0x44a   :  { %v6384_v20 = vpop.f32.mrb[3].mxu1 }
 0x44b   :  { %4952 = vmatmul.mubr.msk.f32.vlgmr.msra.gmra.mrb[12].mxu1 %vm261_vm1, %v6237_v18  ;;  %v6402_v1 = vpop.f32.mrb[4].mxu1 }
 0x44c   :  { %4954 = vmatprep.mubr.msk.f32.mxu1 %vm261_vm1, %v1075_v55  ;;  %5241 = vmatpush3.bf16.msra.mxu1 %v5238_v38  ;;  %v4869_v7 = vpop.f32.mrb[66].mxu0  ;;  %v6408_v0 = vpop.f32.mrb[5].mxu1 }
 0x44d   :  { %5243 = vmatprep.subr.bf16.mxu1 %v5242_v22  ;;  %v1105_v9 = vpop.f32.mrb[67].mxu0  ;;  %v6426_v10 = vpop.f32.mrb[6].mxu1 }
 0x44e   :  { %v6432_v11 = vpop.f32.mrb[7].mxu1 }
 0x44f   :  { %4955 = vmatmul.mubr.msk.f32.gmra.mrb[10].mxu1 %vm261_vm1, %v4860_v52 }
 0x450   :  { %4961 = vmatprep.mubr.msk.f32.mxu1 %vm261_vm1, %v6241_v30  ;;  %v4872_v12 = vpop.f32.mrb[68].mxu0  ;;  %v1317_v30 = vld [vmem:[%s6774_s3 + $0x68] sm:$0xff] }
 0x451   :  { %v1115_v16 = vpop.f32.mrb[69].mxu0  ;;  %v5250_v4 = vpack.c.bf16 %v1317_v30, %v1316_v21  ;;  %v1325_v30 = vld [vmem:[%s6774_s3 + $0xa8] sm:$0xff] }
 0x453   :  { %4962 = vmatmul.mubr.msk.f32.vlgmr.msra.gmra.mrb[12].mxu1 %vm261_vm1, %v6239_v29 }
 0x454   :  { %4964 = vmatprep.mubr.msk.f32.mxu1 %vm261_vm1, %v1085_v58  ;;  %5245 = vmatpush3.bf16.msra.mxu1 %v5242_v22  ;;  %v6347_v17 = vpop.f32.mrb[70].mxu0  ;;  %v1321_v58 = vld [vmem:[%s6774_s3 + $0x88] sm:$0xff] }
 0x455   :  { %5247 = vmatprep.subr.bf16.mxu1 %v5246_v15  ;;  %v1125_v18 = vpop.f32.mrb[71].mxu0 }
 0x457   :  { %4965 = vmatmul.mubr.msk.f32.gmra.mrb[10].mxu1 %vm261_vm1, %v4863_v56 }
 0x458   :  { %4971 = vmatprep.mubr.msk.f32.mxu1 %vm261_vm1, %v6245_v25  ;;  %v6360_v29 = vpop.f32.mrb[72].mxu0  ;;  %v1318_v25 = vld [vmem:[%s6774_s3 + $0x70] sm:$0xff] }
 0x459   :  { %v1135_v5 = vpop.f32.mrb[73].mxu0  ;;  %v5254_v52 = vpack.c.bf16 %v1319_v46, %v1318_v25 }
 0x45b   :  { %4972 = vmatmul.mubr.msk.f32.vlgmr.msra.gmra.mrb[12].mxu1 %vm261_vm1, %v6243_v24 }
 0x45c   :  { %4974 = vmatprep.mubr.msk.f32.mxu1 %vm261_vm1, %v1095_v23  ;;  %5249 = vmatpush3.bf16.msra.mxu1 %v5246_v15  ;;  %v6367_v6 = vpop.f32.mrb[74].mxu0 }
 0x45d   :  { %5251 = vmatprep.subr.bf16.mxu1 %v5250_v4  ;;  %v6369_v39 = vpop.f32.mrb[75].mxu0 }
 0x45f   :  { %4975 = vmatmul.mubr.msk.f32.gmra.mrb[10].mxu1 %vm261_vm1, %v4866_v3 }
 0x460   :  { %4981 = vmatprep.mubr.msk.f32.mxu1 %vm261_vm1, %v6249_v31  ;;  %v6382_v24 = vpop.f32.mrb[76].mxu0  ;;  %v1320_v31 = vld [vmem:[%s6774_s3 + $0x80] sm:$0xff] }
 0x461   :  { %v6386_v55 = vpop.f32.mrb[77].mxu0  ;;  %v5258_v3 = vpack.c.bf16 %v1321_v58, %v1320_v31  ;;  %v1327_v31 = vld [vmem:[%s6774_s3 + $0xb8] sm:$0xff] }
 0x463   :  { %4982 = vmatmul.mubr.msk.f32.vlgmr.msra.gmra.mrb[12].mxu1 %vm261_vm1, %v6247_v27 }
 0x464   :  { %4984 = vmatprep.mubr.msk.f32.mxu1 %vm261_vm1, %v1105_v9  ;;  %5253 = vmatpush3.bf16.msra.mxu1 %v5250_v4  ;;  %v6391_v38 = vpop.f32.mrb[78].mxu0  ;;  %v1323_v9 = vld [vmem:[%s6774_s3 + $0x98] sm:$0xff] }
 0x465   :  { %5255 = vmatprep.subr.bf16.mxu1 %v5254_v52  ;;  %v6393_v56 = vpop.f32.mrb[79].mxu0 }
 0x467   :  { %4985 = vmatmul.mubr.msk.f32.gmra.mrb[10].mxu1 %vm261_vm1, %v4869_v7 }
 0x468   :  { %4991 = vmatprep.mubr.msk.f32.mxu1 %vm261_vm1, %v6253_v33  ;;  %v6406_v27 = vpop.f32.mrb[80].mxu0  ;;  %v1322_v33 = vld [vmem:[%s6774_s3 + $0x90] sm:$0xff] }
 0x469   :  { %v6410_v22 = vpop.f32.mrb[81].mxu0  ;;  %v5262_v15 = vpack.c.bf16 %v1323_v9, %v1322_v33 }
 0x46b   :  { %4992 = vmatmul.mubr.msk.f32.vlgmr.msra.gmra.mrb[12].mxu1 %vm261_vm1, %v6251_v32 }
 0x46c   :  { %4994 = vmatprep.mubr.msk.f32.mxu1 %vm261_vm1, %v1115_v16  ;;  %5257 = vmatpush3.bf16.msra.mxu1 %v5254_v52  ;;  %v6415_v23 = vpop.f32.mrb[82].mxu0 }
 0x46d   :  { %5259 = vmatprep.subr.bf16.mxu1 %v5258_v3  ;;  %v6417_v7 = vpop.f32.mrb[83].mxu0 }
 0x46f   :  { %4995 = vmatmul.mubr.msk.f32.gmra.mrb[10].mxu1 %vm261_vm1, %v4872_v12 }
 0x470   :  { %5001 = vmatprep.mubr.msk.f32.mxu1 %vm261_vm1, %v6257_v36  ;;  %v6430_v32 = vpop.f32.mrb[84].mxu0  ;;  %v1324_v36 = vld [vmem:[%s6774_s3 + $0xa0] sm:$0xff] }
 0x471   :  { %v6434_v16 = vpop.f32.mrb[85].mxu0  ;;  %v5266_v25 = vpack.c.bf16 %v1325_v30, %v1324_v36 }
 0x473   :  { %5002 = vmatmul.mubr.msk.f32.vlgmr.msra.gmra.mrb[12].mxu1 %vm261_vm1, %v6255_v34  ;;  %v6451_v34 = vpop.f32.mrb[8].mxu1 }
 0x474   :  { %5004 = vmatprep.mubr.msk.f32.mxu1 %vm261_vm1, %v1125_v18  ;;  %5261 = vmatpush3.bf16.msra.mxu1 %v5258_v3  ;;  %v6439_v21 = vpop.f32.mrb[86].mxu0  ;;  %v6457_v4 = vpop.f32.mrb[9].mxu1 }
 0x475   :  { %5263 = vmatprep.subr.bf16.mxu1 %v5262_v15  ;;  %v6441_v12 = vpop.f32.mrb[87].mxu0 }
 0x477   :  { %5005 = vmatmul.mubr.msk.f32.gmra.mrb[10].mxu1 %vm261_vm1, %v6347_v17 }
 0x478   :  { %5011 = vmatprep.mubr.msk.f32.mxu1 %vm261_vm1, %v6261_v48  ;;  %v6455_v18 = vpop.f32.mrb[88].mxu0  ;;  %v1326_v48 = vld [vmem:[%s6774_s3 + $0xb0] sm:$0xff] }
 0x479   :  { %v6459_v46 = vpop.f32.mrb[89].mxu0 }
 0x47b   :  { %5012 = vmatmul.mubr.msk.f32.vlgmr.msra.gmra.mrb[12].mxu1 %vm261_vm1, %v6259_v35 }
 0x47c   :  { %5014 = vmatprep.mubr.msk.f32.mxu1 %vm261_vm1, %v1135_v5  ;;  %5265 = vmatpush3.bf16.msra.mxu1 %v5262_v15  ;;  %v6464_v52 = vpop.f32.mrb[90].mxu0  ;;  %v5270_v5 = vpack.c.bf16 %v1327_v31, %v1326_v48 }
 0x47d   :  { %5267 = vmatprep.subr.bf16.mxu1 %v5266_v25  ;;  %v6466_v17 = vpop.f32.mrb[91].mxu0 }
 0x47f   :  { %5015 = vmatmul.mubr.msk.f32.gmra.mrb[10].mxu1 %vm261_vm1, %v6360_v29  ;;  %v1329_v29 = vld [vmem:[%s6774_s3 + $0xc8] sm:$0xff] }
 0x480   :  { %5021 = vmatprep.mubr.msk.f32.mxu1 %vm261_vm1, %v6265_v37  ;;  %v6478_v35 = vpop.f32.mrb[92].mxu0  ;;  %v1328_v37 = vld [vmem:[%s6774_s3 + $0xc0] sm:$0xff] }
 0x481   :  { %v6480_v58 = vpop.f32.mrb[93].mxu0 }
 0x483   :  { %5022 = vmatmul.mubr.msk.f32.vlgmr.msra.gmra.mrb[12].mxu1 %vm261_vm1, %v6263_v45 }
 0x484   :  { %5024 = vmatprep.mubr.msk.f32.mxu1 %vm261_vm1, %v6369_v39  ;;  %5269 = vmatpush3.bf16.msra.mxu1 %v5266_v25  ;;  %v6486_v3 = vpop.f32.mrb[94].mxu0  ;;  %v5274_v39 = vpack.c.bf16 %v1329_v29, %v1328_v37 }
 0x485   :  { %5271 = vmatprep.subr.bf16.mxu1 %v5270_v5  ;;  %v6488_v33 = vpop.f32.mrb[95].mxu0 }
 0x487   :  { %5025 = vmatmul.mubr.msk.f32.gmra.mrb[10].mxu1 %vm261_vm1, %v6367_v6  ;;  %v1331_v6 = vld [vmem:[%s6774_s3 + $0xd8] sm:$0xff] }
 0x488   :  { %5031 = vmatprep.mubr.msk.f32.mxu1 %vm261_vm1, %v6269_v62  ;;  %v6500_v45 = vpop.f32.mrb[96].mxu0  ;;  %v1330_v62 = vld [vmem:[%s6774_s3 + $0xd0] sm:$0xff] }
 0x489   :  { %v6502_v9 = vpop.f32.mrb[97].mxu0 }
 0x48b   :  { %5032 = vmatmul.mubr.msk.f32.vlgmr.msra.gmra.mrb[12].mxu1 %vm261_vm1, %v6267_v40 }
 0x48c   :  { %5034 = vmatprep.mubr.msk.f32.mxu1 %vm261_vm1, %v6386_v55  ;;  %5273 = vmatpush3.bf16.msra.mxu1 %v5270_v5  ;;  %v6508_v15 = vpop.f32.mrb[98].mxu0  ;;  %v5278_v55 = vpack.c.bf16 %v1331_v6, %v1330_v62 }
 0x48d   :  { %5275 = vmatprep.subr.bf16.mxu1 %v5274_v39  ;;  %v6510_v36 = vpop.f32.mrb[99].mxu0 }
 0x48f   :  { %5035 = vmatmul.mubr.msk.f32.gmra.mrb[10].mxu1 %vm261_vm1, %v6382_v24  ;;  %v1333_v24 = vld [vmem:[%s6774_s3 + $0xe8] sm:$0xff] }
 0x490   :  { %5041 = vmatprep.mubr.msk.f32.mxu1 %vm261_vm1, %v6273_v59  ;;  %v6522_v40 = vpop.f32.mrb[100].mxu0  ;;  %v1332_v59 = vld [vmem:[%s6774_s3 + $0xe0] sm:$0xff] }
 0x491   :  { %v6524_v30 = vpop.f32.mrb[101].mxu0 }
 0x493   :  { %5042 = vmatmul.mubr.msk.f32.vlgmr.msra.gmra.mrb[12].mxu1 %vm261_vm1, %v6271_v41 }
 0x494   :  { %5044 = vmatprep.mubr.msk.f32.mxu1 %vm261_vm1, %v6393_v56  ;;  %5277 = vmatpush3.bf16.msra.mxu1 %v5274_v39  ;;  %v6530_v25 = vpop.f32.mrb[102].mxu0  ;;  %v5282_v56 = vpack.c.bf16 %v1333_v24, %v1332_v59 }
 0x495   :  { %5279 = vmatprep.subr.bf16.mxu1 %v5278_v55  ;;  %v6532_v48 = vpop.f32.mrb[103].mxu0 }
 0x497   :  { %5045 = vmatmul.mubr.msk.f32.gmra.mrb[10].mxu1 %vm261_vm1, %v6391_v38  ;;  %v1334_v38 = vld [vmem:[%s6774_s3 + $0xf0] sm:$0xff] }
 0x498   :  { %5051 = vmatprep.mubr.msk.f32.mxu1 %vm261_vm1, %v6277_v43  ;;  %v6544_v41 = vpop.f32.mrb[104].mxu0  ;;  %v1335_v43 = vld [vmem:[%s6774_s3 + $0xf8] sm:$0xff] }
 0x499   :  { %v6546_v31 = vpop.f32.mrb[105].mxu0 }
 0x49b   :  { %5052 = vmatmul.mubr.msk.f32.vlgmr.msra.gmra.mrb[12].mxu1 %vm261_vm1, %v6275_v42  ;;  %v5286_v42 = vpack.c.bf16 %v1335_v43, %v1334_v38 }
 0x49c   :  { %5054 = vmatprep.mubr.msk.f32.mxu1 %vm261_vm1, %v6410_v22  ;;  %5281 = vmatpush3.bf16.msra.mxu1 %v5278_v55  ;;  %v1336_v22 = vld [vmem:[%s6774_s3 + $0x100] sm:$0xff] }
 0x49d   :  { %5283 = vmatprep.subr.bf16.mxu1 %v5282_v56 }
 0x49f   :  { %5055 = vmatmul.mubr.msk.f32.gmra.mrb[10].mxu1 %vm261_vm1, %v6406_v27  ;;  %v1337_v27 = vld [vmem:[%s6774_s3 + $0x108] sm:$0xff] }
 0x4a0   :  { %5061 = vmatprep.mubr.msk.f32.mxu1 %vm261_vm1, %v6281_v14  ;;  %v1338_v14 = vld [vmem:[%s6774_s3 + $0x110] sm:$0xff] }
 0x4a3   :  { %5062 = vmatmul.mubr.msk.f32.vlgmr.msra.gmra.mrb[12].mxu1 %vm261_vm1, %v6279_v44  ;;  %v5290_v44 = vpack.c.bf16 %v1337_v27, %v1336_v22 }
 0x4a4   :  { %5064 = vmatprep.mubr.msk.f32.mxu1 %vm261_vm1, %v6417_v7  ;;  %5285 = vmatpush3.bf16.msra.mxu1 %v5282_v56  ;;  %v1341_v7 = vld [vmem:[%s6774_s3 + $0x128] sm:$0xff] }
 0x4a5   :  { %5287 = vmatprep.subr.bf16.mxu1 %v5286_v42 }
 0x4a7   :  { %5065 = vmatmul.mubr.msk.f32.gmra.mrb[10].mxu1 %vm261_vm1, %v6415_v23  ;;  %v1339_v23 = vld [vmem:[%s6774_s3 + $0x118] sm:$0xff] }
 0x4a8   :  { %5071 = vmatprep.mubr.msk.f32.mxu1 %vm261_vm1, %v6285_v47  ;;  %v1340_v47 = vld [vmem:[%s6774_s3 + $0x120] sm:$0xff] }
 0x4ab   :  { %5072 = vmatmul.mubr.msk.f32.vlgmr.msra.gmra.mrb[12].mxu1 %vm261_vm1, %v6283_v13  ;;  %v5294_v13 = vpack.c.bf16 %v1339_v23, %v1338_v14 }
 0x4ac   :  { %5074 = vmatprep.mubr.msk.f32.mxu1 %vm261_vm1, %v6434_v16  ;;  %5289 = vmatpush3.bf16.msra.mxu1 %v5286_v42 }
 0x4ad   :  { %5291 = vmatprep.subr.bf16.mxu1 %v5290_v44 }
 0x4af   :  { %5075 = vmatmul.mubr.msk.f32.gmra.mrb[10].mxu1 %vm261_vm1, %v6430_v32  ;;  %v1343_v32 = vld [vmem:[%s6774_s3 + $0x138] sm:$0xff] }
 0x4b0   :  { %5081 = vmatprep.mubr.msk.f32.mxu1 %vm261_vm1, %v6289_v26  ;;  %v1342_v26 = vld [vmem:[%s6774_s3 + $0x130] sm:$0xff] }
 0x4b3   :  { %5082 = vmatmul.mubr.msk.f32.vlgmr.msra.gmra.mrb[12].mxu1 %vm261_vm1, %v6287_v49  ;;  %v5298_v49 = vpack.c.bf16 %v1341_v7, %v1340_v47 }
 0x4b4   :  { %5084 = vmatprep.mubr.msk.f32.mxu1 %vm261_vm1, %v6441_v12  ;;  %5293 = vmatpush3.bf16.msra.mxu1 %v5290_v44  ;;  %v1346_v12 = vld [vmem:[%s6774_s3 + $0x150] sm:$0xff] }
 0x4b5   :  { %5295 = vmatprep.subr.bf16.mxu1 %v5294_v13 }
 0x4b7   :  { %5085 = vmatmul.mubr.msk.f32.gmra.mrb[10].mxu1 %vm261_vm1, %v6439_v21  ;;  %v1344_v21 = vld [vmem:[%s6774_s3 + $0x140] sm:$0xff] }
 0x4b8   :  { %5091 = vmatprep.mubr.msk.f32.mxu1 %vm261_vm1, %v6293_v54 }
 0x4bb   :  { %5092 = vmatmul.mubr.msk.f32.vlgmr.msra.gmra.mrb[12].mxu1 %vm261_vm1, %v6291_v53  ;;  %v5302_v53 = vpack.c.bf16 %v1343_v32, %v1342_v26 }
 0x4bc   :  { %5094 = vmatprep.mubr.msk.f32.mxu1 %vm261_vm1, %v6459_v46  ;;  %5297 = vmatpush3.bf16.msra.mxu1 %v5294_v13  ;;  %v1349_v46 = vld [vmem:[%s6774_s3 + $0x168] sm:$0xff] }
 0x4bd   :  { %5299 = vmatprep.subr.bf16.mxu1 %v5298_v49 }
 0x4bf   :  { %5095 = vmatmul.mubr.msk.f32.gmra.mrb[10].mxu1 %vm261_vm1, %v6455_v18  ;;  %v1347_v18 = vld [vmem:[%s6774_s3 + $0x158] sm:$0xff] }
 0x4c0   :  { %5101 = vmatprep.mubr.msk.f32.mxu1 %vm261_vm1, %v6297_v51  ;;  %v1345_v51 = vld [vmem:[%s6774_s3 + $0x148] sm:$0xff] }
 0x4c2   :  { %v6618_v54 = vpop.f32.mrb[106].mxu0 }
 0x4c3   :  { %5102 = vmatmul.mubr.msk.f32.vlgmr.msra.gmra.mrb[12].mxu1 %vm261_vm1, %v6295_v50  ;;  %v6622_v16 = vpop.f32.mrb[107].mxu0  ;;  %v5306_v50 = vpack.c.bf16 %v1345_v51, %v1344_v21 }
 0x4c4   :  { %5104 = vmatprep.mubr.msk.f32.mxu1 %vm261_vm1, %v6466_v17  ;;  %5301 = vmatpush3.bf16.msra.mxu1 %v5298_v49  ;;  %v1353_v17 = vld [vmem:[%s6774_s3 + $0x188] sm:$0xff] }
 0x4c5   :  { %5303 = vmatprep.subr.bf16.mxu1 %v5302_v53 }
 0x4c7   :  { %5105 = vmatmul.mubr.msk.f32.gmra.mrb[10].mxu1 %vm261_vm1, %v6464_v52  ;;  %v1351_v52 = vld [vmem:[%s6774_s3 + $0x178] sm:$0xff] }
 0x4c8   :  { %5111 = vmatprep.mubr.msk.f32.mxu1 %vm261_vm1, %v6301_v60  ;;  %v1348_v60 = vld [vmem:[%s6774_s3 + $0x160] sm:$0xff] }
 0x4cb   :  { %5112 = vmatmul.mubr.msk.f32.vlgmr.msra.gmra.mrb[12].mxu1 %vm261_vm1, %v6299_v57  ;;  %v5310_v57 = vpack.c.bf16 %v1347_v18, %v1346_v12 }
 0x4cc   :  { %5114 = vmatprep.mubr.msk.f32.mxu1 %vm261_vm1, %v6480_v58  ;;  %5305 = vmatpush3.bf16.msra.mxu1 %v5302_v53 }
 0x4cd   :  { %5307 = vmatprep.subr.bf16.mxu1 %v5306_v50 }
 0x4cf   :  { %5115 = vmatmul.mubr.msk.f32.gmra.mrb[10].mxu1 %vm261_vm1, %v6478_v35 }
 0x4d0   :  { %5121 = vmatprep.mubr.msk.f32.mxu1 %vm261_vm1, %v6305_v8  ;;  %v1350_v8 = vld [vmem:[%s6774_s3 + $0x170] sm:$0xff] }
 0x4d3   :  { %5122 = vmatmul.mubr.msk.f32.vlgmr.msra.gmra.mrb[12].mxu1 %vm261_vm1, %v6303_v61  ;;  %v5314_v61 = vpack.c.bf16 %v1349_v46, %v1348_v60 }
 0x4d4   :  { %5124 = vmatprep.mubr.msk.f32.mxu1 %vm261_vm1, %v6488_v33  ;;  %5309 = vmatpush3.bf16.msra.mxu1 %v5306_v50 }
 0x4d5   :  { %5311 = vmatprep.subr.bf16.mxu1 %v5310_v57 }
 0x4d7   :  { %5125 = vmatmul.mubr.msk.f32.gmra.mrb[10].mxu1 %vm261_vm1, %v6486_v3 }
 0x4d8   :  { %5131 = vmatprep.mubr.msk.f32.mxu1 %vm261_vm1, %v6362_v2  ;;  %v1352_v2 = vld [vmem:[%s6774_s3 + $0x180] sm:$0xff] }
 0x4db   :  { %5132 = vmatmul.mubr.msk.f32.vlgmr.msra.gmra.mrb[12].mxu1 %vm261_vm1, %v6356_v63  ;;  %v5318_v63 = vpack.c.bf16 %v1351_v52, %v1350_v8 }
 0x4dc   :  { %5134 = vmatprep.mubr.msk.f32.mxu1 %vm261_vm1, %v6502_v9  ;;  %5313 = vmatpush3.bf16.msra.mxu1 %v5310_v57 }
 0x4dd   :  { %5315 = vmatprep.subr.bf16.mxu1 %v5314_v61 }
 0x4df   :  { %5135 = vmatmul.mubr.msk.f32.gmra.mrb[10].mxu1 %vm261_vm1, %v6500_v45 }
 0x4e0   :  { %5141 = vmatprep.mubr.msk.f32.mxu1 %vm261_vm1, %v6384_v20  ;;  %v6717_v20 = vld [vmem:[%s6775_s4 + $0x1] sm:$0x1] }
 0x4e3   :  { %5142 = vmatmul.mubr.msk.f32.vlgmr.msra.gmra.mrb[12].mxu1 %vm261_vm1, %v6378_v19  ;;  %v5322_v19 = vpack.c.bf16 %v1353_v17, %v1352_v2  ;;  %v23_v17 = vld [vmem:[%s6775_s4 + $0x2] sm:$0x3]  ;;  %s5475_s4 = smov [#allocation2]  }
 0x4e4   :  { %5144 = vmatprep.mubr.msk.f32.mxu1 %vm261_vm1, %v6510_v36  ;;  %5317 = vmatpush3.bf16.msra.mxu1 %v5314_v61 }
 0x4e5   :  { %5319 = vmatprep.subr.bf16.mxu1 %v5318_v63 }
 0x4e7   :  { %5145 = vmatmul.mubr.msk.f32.gmra.mrb[10].mxu1 %vm261_vm1, %v6508_v15 }
 0x4e8   :  { %5151 = vmatprep.mubr.msk.f32.mxu1 %vm261_vm1, %v6408_v0 }
 0x4eb   :  { %5152 = vmatmul.mubr.msk.f32.vlgmr.msra.gmra.mrb[12].mxu1 %vm261_vm1, %v6402_v1  ;;  %v3874_v1 = vrot.slane %v6717_v20, %v5591_v28 }
 0x4ec   :  { %5154 = vmatprep.mubr.msk.f32.mxu1 %vm261_vm1, %v6524_v30  ;;  %5321 = vmatpush3.bf16.msra.mxu1 %v5318_v63 }
 0x4ed   :  { %5323 = vmatprep.subr.bf16.mxu1 %v5322_v19 }
 0x4ef   :  { %5155 = vmatmul.mubr.msk.f32.gmra.mrb[10].mxu1 %vm261_vm1, %v6522_v40 }
 0x4f0   :  { %5161 = vmatprep.mubr.msk.f32.mxu1 %vm261_vm1, %v6432_v11 }
 0x4f3   :  { %5162 = vmatmul.mubr.msk.f32.vlgmr.msra.gmra.mrb[12].mxu1 %vm261_vm1, %v6426_v10 }
 0x4f4   :  { %5164 = vmatprep.mubr.msk.f32.mxu1 %vm261_vm1, %v6532_v48  ;;  %5325 = vmatpush3.bf16.msra.mxu1 %v5322_v19  ;;  %v5473_v19 = vmov 0.0  }
 0x4f5   :  { %5177 = vmatprep.subr.mxu0 %v5473_v19  ;;  %5179 = vmatprep.mubr.msk.f32.mxu0 %vm5474_vm4, %v5473_v19 }
 0x4f6   :  { %5178 = vmatpush3.xpose.msk.msra.mxu0 %vm3883_vm3, %v23_v17 }
 0x4f7   :  { %5165 = vmatmul.mubr.msk.f32.gmra.mrb[10].mxu1 %vm261_vm1, %v6530_v25 }
 0x4f8   :  { %5171 = vmatprep.mubr.msk.f32.mxu1 %vm261_vm1, %v6457_v4 }
 0x4fb   :  { %5172 = vmatmul.mubr.msk.f32.vlgmr.msra.gmra.mrb[12].mxu1 %vm261_vm1, %v6451_v34 }
 0x4fc   :  { %5174 = vmatprep.mubr.msk.f32.mxu1 %vm261_vm1, %v6546_v31 }
 0x4ff   :  { %5175 = vmatmul.mubr.msk.f32.gmra.mrb[10].mxu1 %vm261_vm1, %v6544_v41 }
 0x5ce   :  { %v5173_v0 = vpop.f32.mrb[12].mxu1 }
 0x5cf   :  { %v5336_v10 = vadd.f32 %v5173_v0, %v6618_v54  ;;  %v3848_v11 = vpop.f32.mrb[13].mxu1 }
 0x5d0   :  { %v5337_v34 = vadd.f32 %v3848_v11, %v6622_v16 }
 0x5d1   :  { %v3876_v4 = vadd.f32 %v5336_v10, %v3874_v1 }
 0x5d2   :  { %v3875_v35 = vadd.f32 %v5337_v34, %v3874_v1  ;;  %v5176_v5 = vpop.f32.mrb[10].mxu1 }
 0x5d3   :  { %v6723_v58 = vmax.f32 %v3876_v4, 0.0  ;;  %v3878_v3 = vadd.f32 %v5176_v5, %v3874_v1  ;;  %v3858_v33 = vpop.f32.mrb[11].mxu1 }
 0x5d4   :  { %v6725_v37 = vmax.f32 %v3875_v35, 0.0  ;;  %v3877_v29 = vadd.f32 %v3874_v1, %v3858_v33 }
 0x5d5   :  { %v3885_v45 = vsel %vm3883_vm3, %v6723_v58, 0.0  ;;  %v3900_v39 = vmul.f32 %v6723_v58, %v6723_v58  ;;  %v3882_v9 = vmax.f32 %v3878_v3, 0.0 }
 0x5d6   :  { %v3884_v15 = vsel %vm3883_vm3, %v6725_v37, 0.0  ;;  %v3899_v36 = vmul.f32 %v6725_v37, %v6725_v37  ;;  %v3881_v62 = vmax.f32 %v3877_v29, 0.0 }
 0x5d7   :  { %v3904_v6 = vsel %vm3883_vm3, %v3900_v39, 0.0  ;;  %v3886_v40 = vadd.f32 %v3885_v45, %v3884_v15  ;;  %v3902_v30 = vmul.f32 %v3882_v9, %v3882_v9  ;;  %v3889_v41 = vsel %vm3883_vm3, %v3882_v9, 0.0 }
 0x5d8   :  { %v3903_v55 = vsel %vm3883_vm3, %v3899_v36, 0.0  ;;  %v3887_v25 = vsel %vm3883_vm3, %v3881_v62, 0.0  ;;  %v3901_v48 = vmul.f32 %v3881_v62, %v3881_v62 }
 0x5d9   :  { %v3888_v59 = vadd.f32 %v3887_v25, %v3886_v40  ;;  %v3905_v24 = vadd.f32 %v3904_v6, %v3903_v55  ;;  %v3908_v43 = vsel %vm3883_vm3, %v3902_v30, 0.0 }
 0x5da   :  { %v3906_v56 = vsel %vm3883_vm3, %v3901_v48, 0.0 }
 0x5db   :  { %v3890_v31 = vadd.f32 %v3889_v41, %v3888_v59  ;;  %v3907_v38 = vadd.f32 %v3906_v56, %v3905_v24 }
 0x5dd   :  { %v3891_v42 = vrot.slane %v3890_v31, 4  ;;  %v3909_v22 = vadd.f32 %v3908_v43, %v3907_v38 }
 0x5df   :  { %v3892_v27 = vadd.f32 %v3891_v42, %v3890_v31  ;;  %v3910_v44 = vrot.slane %v3909_v22, 4 }
 0x5e1   :  { %v3893_v14 = vrot.slane %v3892_v27, 2  ;;  %v3911_v23 = vadd.f32 %v3910_v44, %v3909_v22 }
 0x5e3   :  { %v3894_v13 = vadd.f32 %v3893_v14, %v3892_v27  ;;  %v3912_v47 = vrot.slane %v3911_v23, 2 }
 0x5e5   :  { %v3895_v7 = vrot.slane %v3894_v13, 1  ;;  %v3913_v49 = vadd.f32 %v3912_v47, %v3911_v23 }
 0x5e7   :  { %v3896_v26 = vadd.f32 %v3895_v7, %v3894_v13  ;;  %v3914_v32 = vrot.slane %v3913_v49, 1 }
 0x5e9   :  { %v3898_v53 = vmul.f32 0.03125, %v3896_v26  ;;  %v3915_v54 = vadd.f32 %v3914_v32, %v3913_v49 }
 0x5eb   :  { %v3916_v16 = vmul.f32 0.03125, %v3915_v54  ;;  %v3917_v21 = vmul.f32 %v3898_v53, %v3898_v53 }
 0x5ed   :  { %v3918_v51 = vsub.f32 %v3916_v16, %v3917_v21 }
 0x5ef   :  { %v3919_v50 = vmax.f32 %v3918_v51, 0.0 }
 0x5f1   :  { %v3920_v12 = vadd.f32 1e-05, %v3919_v50 }
 0x5f3   :  { %5442 = vrsqrt.f32 %v3920_v12 }
 0x5fd   :  { %v5443_v18 = vpop.eup %5442 }
 0x5fe   :  { %3923 = vrot.lane.b32.xlu1 %v5443_v18, %s5470_s15 }
 0x670   :  { %v3924_v57 = vpop.permute.xlu1 %3923 }
 0x671   :  { %v3926_v60 = vmul.f32 %v3924_v57, %v6717_v20 }
 0x673   :  { %3940 = vrot.lane.b32.xlu0 %v3926_v60, %s5471_s16  ;;  %v3930_v46 = vrot.slane %v3926_v60, %v5591_v28 }
 0x677   :  { %3932 = vrot.lane.b32.xlu0 %v3930_v46, %s5471_s16  ;;  %s4066_s16 = sshll.u32 %s5475_s4, 4  ;;  %s4067_s16 = int_to_ptr.vmem [resolvable:$true] %s4066_s16 }
 0x678   :  { %s5444_s1 = scalar_lea.vmem %s4067_s16, 32  ;;  %p5449_p1 = scmp.lt.s32.totalorder %s4067_s16, %s4067_s16 }
 0x679   :  { %p5445_p0 = scmp.ne.s32.totalorder %s4067_s16, %s5444_s1  ;;  %p5450_p2 = scmp.lt.s32.totalorder %s5444_s1, %s5444_s1 }
 0x67b   :  { %p5451_p3 = por %p5450_p2, %p5449_p1 }
 0x67d   :  { %p5452_p4 = pnand %p5451_p3, %p5445_p0 }
 0x6e5   :  { %v3941_v61 = vpop.permute.xlu0 %3940 }
 0x6e6   :  { %v3943_v8 = vmul.f32 %v3941_v61, %v3898_v53 }
 0x6e8   :  { %3945 = vrot.lane.b32.xlu1 %v3943_v8, %s5472_s14 }
 0x6e9   :  { %v3933_v1 = vpop.permute.xlu0 %3932 }
 0x6ea   :  { %v3935_v0 = vmul.f32 %v3933_v1, %v6725_v37  ;;  %v3936_v10 = vmul.f32 %v3933_v1, %v6723_v58  ;;  %v3937_v11 = vmul.f32 %v3933_v1, %v3881_v62 }
 0x75a   :  { %v3946_v52 = vpop.permute.xlu1 %3945 }
 0x75b   :  { %v3948_v63 = vsub.f32 %v6717_v20, %v3946_v52  ;;  %v3938_v20 = vmul.f32 %v3933_v1, %v3882_v9 }
 0x75d   :  { %v3952_v2 = vrot.slane %v3948_v63, %v5591_v28 }
 0x75f   :  { %3954 = vrot.lane.b32.xlu1 %v3952_v2, %s5472_s14 }
 0x7d1   :  { %v3955_v34 = vpop.permute.xlu1 %3954 }
 0x7d2   :  { %v3957_v28 = vadd.f32 %v3955_v34, %v3935_v0  ;;  %v3958_v4 = vadd.f32 %v3955_v34, %v3936_v10  ;;  %v3959_v35 = vadd.f32 %v3955_v34, %v3937_v11  ;;  %v3960_v5 = vadd.f32 %v3955_v34, %v3938_v20 }
 0x7d4   :  { %v3961_v3 = vsel %vm3883_vm3, %v3957_v28, 0.0  ;;  %v3962_v33 = vsel %vm3883_vm3, %v3958_v4, 0.0  ;;  %v3970_v29 = vsel %vm3883_vm3, %v3959_v35, 0.0  ;;  %v3971_v45 = vsel %vm3883_vm3, %v3960_v5, 0.0 }
 0x7d5   :  { %v3963_v39 = vadd.f32 %v3962_v33, %v3961_v3  ;;  %v3972_v15 = vadd.f32 %v3971_v45, %v3970_v29 }
 0x7d7   :  { %v3964_v37 = vrot.slane %v3963_v39, 4  ;;  %v3973_v36 = vrot.slane %v3972_v15, 4 }
 0x7d9   :  { %v3965_v58 = vadd.f32 %v3964_v37, %v3963_v39  ;;  %v3974_v62 = vadd.f32 %v3973_v36, %v3972_v15 }
 0x7db   :  { %v3966_v9 = vrot.slane %v3965_v58, 2  ;;  %v3975_v6 = vrot.slane %v3974_v62, 2 }
 0x7dd   :  { %v3967_v40 = vadd.f32 %v3966_v9, %v3965_v58  ;;  %v3976_v55 = vadd.f32 %v3975_v6, %v3974_v62 }
 0x7df   :  { %v3968_v30 = vrot.slane %v3967_v40, 1  ;;  %v3977_v25 = vrot.slane %v3976_v55, 1 }
 0x7e1   :  { %v3969_v48 = vadd.f32 %v3968_v30, %v3967_v40  ;;  %v3978_v59 = vadd.f32 %v3977_v25, %v3976_v55 }
 0x7e3   :  { %v3980_v24 = vsel %vm3979_vm5, %v3969_v48, %v3978_v59 }
 0x7e4   :  { %v3981_v41 = vmul.f32 0.0625, %v3980_v24 }
 0x7e6   :  { %5180 = vmatmul.mubr.msk.f32.vlgmr.msra.gmra.mrb[108].mxu0 %vm3883_vm3, %v3981_v41 }
 0x8b9   :  { %v4054_v56 = vpop.f32.mrb[108].mxu0 }
 0x8ba   :  { %4059 = vst.msk [vmem:[#allocation2] sm:$0x3] %vm4058_vm6, %v4054_v56  ;;  %v5181_v31 = vpop.f32.mrb[109].mxu0 }
 0x8bb   :  { %5455 = shalt.err (!%p5452_p4)
}
 0x8bc   :  { %s5456_s19 = scalar_lea.hbm %s6776_s5, 32 }
 0x8bd   :  { %p5457_p5 = scmp.ne.s32.totalorder %s6776_s5, %s5456_s19  ;;  %p5460_p6 = scmp.lt.u32.totalorder %s5456_s19, %s6776_s5 }
 0x8bf   :  { %p5462_p7 = pnand %p5460_p6, %p5457_p5 }
 0x8c1   :  { %5465 = shalt.err (!%p5462_p7)
}
 0x8c2   :  { %4069 = dma.vmem_to_hbm [thread:$0]  %s4067_s16, 32, %s6776_s5, [#allocation3]  }
 0x8c3   :  { %5466 = dma.done.wait [#allocation3], 32  }
 0x8c4   :  { %5467 = vsyncadd [#allocation3], 4294967264 }
 0x8c5   :  { %4073 = vsyncpa [#allocation3], 1 }

</bundles_post_ra>
